<compile_context>
chip_gen: v6e
topology: v6e:2x2x1
jax: 0.10.0
libtpu: 0.0.40
codegen_flags: <defaults>
</compile_context>

<pallas_src>
import functools

import jax
import jax.numpy as jnp
from jax.experimental import pallas as pl
from jax.experimental.pallas import tpu as pltpu


_VMEM = pl.BlockSpec(memory_space=pltpu.MemorySpace.VMEM)


# ----------------------------- Pallas kernels ------------------------------

def _conv_matmul_kernel(w_ref, p_ref, b_ref, o_ref, *, relu):
    """(Cout, K) @ (K, M) + bias, optional fused ReLU.

    M = B*Ho*Wo is the lane axis, so the single output store is lane-dense
    (fully unmasked when M is a multiple of 128, e.g. conv1: 1152, conv2: 128).
    """
    acc = jnp.dot(w_ref[...], p_ref[...], preferred_element_type=jnp.float32)
    acc = acc + b_ref[...]                      # (Cout, 1) broadcast along lanes
    if relu:
        acc = jnp.maximum(acc, 0.0)
    o_ref[...] = acc


def conv_matmul(w2, patches, b, relu=False):
    """w2: (Cout, K), patches: (K, M), b: (Cout, 1) -> (Cout, M) f32."""
    Cout, K = w2.shape
    M = patches.shape[1]
    return pl.pallas_call(
        functools.partial(_conv_matmul_kernel, relu=relu),
        out_shape=jax.ShapeDtypeStruct((Cout, M), jnp.float32),
        in_specs=[_VMEM, _VMEM, _VMEM],
        out_specs=_VMEM,
        cost_estimate=pl.CostEstimate(
            flops=2 * Cout * K * M,
            transcendentals=0,
            bytes_accessed=4 * (Cout * K + K * M + Cout + Cout * M)),
    )(w2, patches, b)


def _mlp_head_kernel(x_ref, w1_ref, b1_ref, w2_ref, b2_ref, o_ref, *, logsoftmax):
    """Fused  y = (relu(x@w1 + b1)) @ w2 + b2  [+ log_softmax]  in one launch.

    The intermediate (B, 50)/(B, 32) activation never touches HBM.
    """
    h = jnp.dot(x_ref[...], w1_ref[...], preferred_element_type=jnp.float32)
    h = jnp.maximum(h + b1_ref[...], 0.0)
    y = jnp.dot(h, w2_ref[...], preferred_element_type=jnp.float32) + b2_ref[...]
    if logsoftmax:
        m = jnp.max(y, axis=-1, keepdims=True)
        s = y - m
        y = s - jnp.log(jnp.sum(jnp.exp(s), axis=-1, keepdims=True))
    o_ref[...] = y


def fused_mlp(x, w1, b1, w2, b2, logsoftmax=False):
    """x: (B, K1), w1: (K1, H1), b1: (1, H1), w2: (H1, N), b2: (1, N)."""
    Bm, K1 = x.shape
    H1 = w1.shape[1]
    N = w2.shape[1]
    return pl.pallas_call(
        functools.partial(_mlp_head_kernel, logsoftmax=logsoftmax),
        out_shape=jax.ShapeDtypeStruct((Bm, N), jnp.float32),
        in_specs=[_VMEM] * 5,
        out_specs=_VMEM,
        cost_estimate=pl.CostEstimate(
            flops=2 * Bm * (K1 * H1 + H1 * N),
            transcendentals=Bm * N if logsoftmax else 0,
            bytes_accessed=4 * (Bm * K1 + K1 * H1 + H1 + H1 * N + N + Bm * N)),
    )(x, w1, b1, w2, b2)


# ------------------------------ JAX glue ops --------------------------------

def im2col_cf(x_cf, k):
    """(C, B, H, W) -> (C*k*k, B*Ho*Wo) patch matrix.

    Row order is (c, i, j), matching PyTorch's (Cout, Cin, kh, kw) weight
    flattening.  TODO(synk): building the patch matrix inside the conv kernel
    would need lane-crossing reshapes of (Ho, Wo) tiles in Mosaic, so im2col
    stays as cheap XLA glue on these tiny tensors.
    """
    C, B, H, W = x_cf.shape
    Ho, Wo = H - k + 1, W - k + 1
    cols = [x_cf[:, :, i:i + Ho, j:j + Wo] for i in range(k) for j in range(k)]
    p = jnp.stack(cols, axis=1)                    # (C, k*k, B, Ho, Wo)
    return p.reshape(C * k * k, B * Ho * Wo)


def conv2d_cf(x_cf, w2, b, k, relu=False):
    """Valid conv, stride 1, channel-first in/out.

    x_cf: (Cin, B, H, W), w2: (Cout, Cin*k*k), b: (Cout, 1)
    -> (Cout, B, Ho, Wo).  All FLOPs run in the Pallas conv_matmul kernel.
    """
    _, B, H, W = x_cf.shape
    Ho, Wo = H - k + 1, W - k + 1
    patches = im2col_cf(x_cf, k)                   # (Cin*k*k, B*Ho*Wo)
    out = conv_matmul(w2, patches, b, relu=relu)   # Pallas, lane-dense output
    return out.reshape(-1, B, Ho, Wo)              # stay channel-first


def max_pool2_cf(x):
    """2x2 max pool, stride 2, floor mode, on channel-first (C, B, H, W)."""
    C, B, H, W = x.shape
    Ho, Wo = H // 2, W // 2
    xc = x[:, :, :Ho * 2, :Wo * 2].reshape(C, B, Ho, 2, Wo, 2)
    return jnp.max(xc, axis=(3, 5))


def affine_grid(theta, size):
    """F.affine_grid, align_corners=False (PyTorch >= 1.3 default)."""
    B, C, H, W = size
    xs = (jnp.arange(W, dtype=jnp.float32) + 0.5) * 2.0 / W - 1.0
    ys = (jnp.arange(H, dtype=jnp.float32) + 0.5) * 2.0 / H - 1.0
    gx, gy = jnp.meshgrid(xs, ys)                              # (H, W)
    base = jnp.stack([gx, gy, jnp.ones_like(gx)], axis=-1)     # (H, W, 3)
    return jnp.einsum('hwk,bnk->bhwn', base, theta)            # (B, H, W, 2)


# TODO(synk): bilinear grid_sample is a data-dependent gather with no clean
# BlockSpec / in-kernel form on TPU; it stays in plain JAX glue.
def grid_sample(x, grid):
    """F.grid_sample, bilinear, padding_mode='zeros', align_corners=False."""
    B, C, H, W = x.shape
    ix = ((grid[..., 0] + 1.0) * W - 1.0) * 0.5
    iy = ((grid[..., 1] + 1.0) * H - 1.0) * 0.5
    ix0 = jnp.floor(ix)
    iy0 = jnp.floor(iy)
    wx1 = ix - ix0
    wy1 = iy - iy0
    wx0 = 1.0 - wx1
    wy0 = 1.0 - wy1

    b_idx = jnp.arange(B)[:, None, None, None]
    c_idx = jnp.arange(C)[None, :, None, None]

    def gather(iy_, ix_):
        valid = ((ix_ >= 0) & (ix_ <= W - 1) & (iy_ >= 0) & (iy_ <= H - 1))
        ix_c = jnp.clip(ix_, 0, W - 1).astype(jnp.int32)
        iy_c = jnp.clip(iy_, 0, H - 1).astype(jnp.int32)
        v = x[b_idx, c_idx, iy_c[:, None, :, :], ix_c[:, None, :, :]]
        return v * valid[:, None, :, :].astype(x.dtype)

    out = (gather(iy0, ix0) * (wy0 * wx0)[:, None]
           + gather(iy0, ix0 + 1.0) * (wy0 * wx1)[:, None]
           + gather(iy0 + 1.0, ix0) * (wy1 * wx0)[:, None]
           + gather(iy0 + 1.0, ix0 + 1.0) * (wy1 * wx1)[:, None])
    return out


# ------------------------------- Parameters ---------------------------------

def init_params(key):
    """PyTorch-default uniform init; conv weights stored pre-flattened
    (Cout, Cin*k*k), biases pre-shaped (Cout, 1) / (1, N) so the trace has no
    per-call weight reshapes."""
    def u(k, fan_in, shape):
        bound = 1.0 / jnp.sqrt(jnp.float32(fan_in))
        return jax.random.uniform(k, shape, jnp.float32, -bound, bound)

    ks = jax.random.split(key, 14)
    p = {}
    # main classifier
    p['conv1_w'] = u(ks[0], 1 * 5 * 5, (10, 1 * 5 * 5))
    p['conv1_b'] = u(ks[1], 1 * 5 * 5, (10, 1))
    p['conv2_w'] = u(ks[2], 10 * 5 * 5, (20, 10 * 5 * 5))
    p['conv2_b'] = u(ks[3], 10 * 5 * 5, (20, 1))
    p['fc1_w'] = u(ks[4], 320, (320, 50))
    p['fc1_b'] = u(ks[5], 320, (1, 50))
    p['fc2_w'] = u(ks[6], 50, (50, 10))
    p['fc2_b'] = u(ks[7], 50, (1, 10))
    # localization network
    p['loc_conv1_w'] = u(ks[8], 1 * 7 * 7, (8, 1 * 7 * 7))
    p['loc_conv1_b'] = u(ks[9], 1 * 7 * 7, (8, 1))
    p['loc_conv2_w'] = u(ks[10], 8 * 5 * 5, (10, 8 * 5 * 5))
    p['loc_conv2_b'] = u(ks[11], 8 * 5 * 5, (10, 1))
    p['fc_loc1_w'] = u(ks[12], 90, (90, 32))
    p['fc_loc1_b'] = u(ks[13], 90, (1, 32))
    # fc_loc[2]: weight zeroed, bias = identity transform (as in Net.__init__)
    p['fc_loc2_w'] = jnp.zeros((32, 6), jnp.float32)
    p['fc_loc2_b'] = jnp.array([[1.0, 0.0, 0.0, 0.0, 1.0, 0.0]], jnp.float32)
    return p


# ------------------------------- Forward pass -------------------------------

def stn(x, p):
    # Localization: Conv(1->8,7) -> Pool -> ReLU -> Conv(8->10,5) -> Pool -> ReLU.
    # ReLU is fused into the conv kernels (valid: ReLU is monotone, commutes
    # with max-pool), activations kept channel-first throughout.
    x_cf = jnp.transpose(x, (1, 0, 2, 3))                             # (1, B, 28, 28)
    out = conv2d_cf(x_cf, p['loc_conv1_w'], p['loc_conv1_b'], 7, relu=True)  # (8, B, 22, 22)
    out = max_pool2_cf(out)                                           # (8, B, 11, 11)
    out = conv2d_cf(out, p['loc_conv2_w'], p['loc_conv2_b'], 5, relu=True)   # (10, B, 7, 7)
    out = max_pool2_cf(out)                                           # (10, B, 3, 3)
    feat = jnp.transpose(out, (1, 0, 2, 3)).reshape(-1, 10 * 3 * 3)   # (B, 90)
    # fc_loc1 + ReLU + fc_loc2 fused into one Pallas kernel.
    theta = fused_mlp(feat, p['fc_loc1_w'], p['fc_loc1_b'],
                      p['fc_loc2_w'], p['fc_loc2_b'],
                      logsoftmax=False).reshape(-1, 2, 3)
    grid = affine_grid(theta, x.shape)
    return grid_sample(x, grid)


def forward(x, p):
    xs = stn(x, p)                                                    # (B, 1, 28, 28)
    h = jnp.transpose(xs, (1, 0, 2, 3))                               # (1, B, 28, 28)
    # relu(maxpool(conv(.))) == maxpool(relu(conv(.))): ReLU fused in kernel.
    h = conv2d_cf(h, p['conv1_w'], p['conv1_b'], 5, relu=True)        # (10, B, 24, 24)
    h = max_pool2_cf(h)                                               # (10, B, 12, 12)
    # TODO(synk): Dropout2d / F.dropout are identity (eval-mode semantics);
    # torch's stochastic dropout RNG is not reproducible here.
    h = conv2d_cf(h, p['conv2_w'], p['conv2_b'], 5, relu=True)        # (20, B, 8, 8)
    h = max_pool2_cf(h)                                               # (20, B, 4, 4)
    feat = jnp.transpose(h, (1, 0, 2, 3)).reshape(-1, 320)            # (B, 320)
    # fc1 + ReLU + fc2 + log_softmax fused into one Pallas kernel.
    return fused_mlp(feat, p['fc1_w'], p['fc1_b'],
                     p['fc2_w'], p['fc2_b'], logsoftmax=True)         # (B, 10)


# ---------------------------------- Main -------------------------------------

if __name__ == "__main__":
    key = jax.random.PRNGKey(0)
    k_param, k_x = jax.random.split(key)
    params = init_params(k_param)
    # MNIST-like input: view(-1, 320) / view(-1, 90) in the module force 28x28.
    x = jax.random.normal(k_x, (2, 1, 28, 28), dtype=jnp.float32)

    out = jax.jit(forward)(x, params)
    out = jax.block_until_ready(out)

    assert out.shape == (2, 10)
    assert bool(jnp.all(jnp.isfinite(out)))
    # rows of log_softmax should exp-sum to 1
    assert bool(jnp.allclose(jnp.sum(jnp.exp(out), axis=1), 1.0, atol=1e-4))
    print("KERNEL_OK")
</pallas_src>

<mosaic_0001>
module attributes {stable_mosaic.version = 11 : i64} {
  func.func @_conv_matmul_kernel(%arg0: memref<8x49xf32, #tpu.memory_space<vmem>>, %arg1: memref<49x968xf32, #tpu.memory_space<vmem>>, %arg2: memref<8x1xf32, #tpu.memory_space<vmem>>, %arg3: memref<8x968xf32, #tpu.memory_space<vmem>>) attributes {dimension_semantics = [], scalar_prefetch = 0 : i64, scratch_operands = 0 : i64, tpu.core_type = #tpu.core_type<tc>} {
    %c0 = arith.constant 0 : index
    %c0_0 = arith.constant 0 : index
    %0 = vector.load %arg0[%c0, %c0_0] : memref<8x49xf32, #tpu.memory_space<vmem>>, vector<8x49xf32>
    %c0_1 = arith.constant 0 : index
    %c0_2 = arith.constant 0 : index
    %1 = vector.load %arg1[%c0_1, %c0_2] : memref<49x968xf32, #tpu.memory_space<vmem>>, vector<49x968xf32>
    %cst = arith.constant dense<0.000000e+00> : vector<8x968xf32>
    %2 = tpu.matmul %0, %1, %cst {dimension_numbers = #tpu.dot_dimension_numbers<[1], [0], [0], [1], [0, 0, 1, 1], [], []>} : vector<8x49xf32>, vector<49x968xf32>, vector<8x968xf32> -> vector<8x968xf32>
    %c0_3 = arith.constant 0 : index
    %c0_4 = arith.constant 0 : index
    %3 = vector.load %arg2[%c0_3, %c0_4] : memref<8x1xf32, #tpu.memory_space<vmem>>, vector<8x1xf32>
    %4 = vector.broadcast %3 : vector<8x1xf32> to vector<8x968xf32>
    %5 = arith.addf %2, %4 : vector<8x968xf32>
    %cst_5 = arith.constant 0.000000e+00 : f32
    %6 = vector.broadcast %cst_5 : f32 to vector<8x968xf32>
    %7 = arith.maximumf %5, %6 : vector<8x968xf32>
    %c0_6 = arith.constant 0 : index
    %c0_7 = arith.constant 0 : index
    %8 = vector.load %arg3[%c0_6, %c0_7] : memref<8x968xf32, #tpu.memory_space<vmem>>, vector<8x968xf32>
    tpu.vector_store %arg3[%c0_6, %c0_7], %7 {strides = array<i32>} : memref<8x968xf32, #tpu.memory_space<vmem>>, vector<8x968xf32>,
    return
  }
}

module attributes {stable_mosaic.version = 11 : i64} {
  func.func @_conv_matmul_kernel(%arg0: memref<10x200xf32, #tpu.memory_space<vmem>>, %arg1: memref<200x98xf32, #tpu.memory_space<vmem>>, %arg2: memref<10x1xf32, #tpu.memory_space<vmem>>, %arg3: memref<10x98xf32, #tpu.memory_space<vmem>>) attributes {dimension_semantics = [], scalar_prefetch = 0 : i64, scratch_operands = 0 : i64, tpu.core_type = #tpu.core_type<tc>} {
    %c0 = arith.constant 0 : index
    %c0_0 = arith.constant 0 : index
    %0 = vector.load %arg0[%c0, %c0_0] : memref<10x200xf32, #tpu.memory_space<vmem>>, vector<10x200xf32>
    %c0_1 = arith.constant 0 : index
    %c0_2 = arith.constant 0 : index
    %1 = vector.load %arg1[%c0_1, %c0_2] : memref<200x98xf32, #tpu.memory_space<vmem>>, vector<200x98xf32>
    %cst = arith.constant dense<0.000000e+00> : vector<10x98xf32>
    %2 = tpu.matmul %0, %1, %cst {dimension_numbers = #tpu.dot_dimension_numbers<[1], [0], [0], [1], [0, 0, 1, 1], [], []>} : vector<10x200xf32>, vector<200x98xf32>, vector<10x98xf32> -> vector<10x98xf32>
    %c0_3 = arith.constant 0 : index
    %c0_4 = arith.constant 0 : index
    %3 = vector.load %arg2[%c0_3, %c0_4] : memref<10x1xf32, #tpu.memory_space<vmem>>, vector<10x1xf32>
    %4 = vector.broadcast %3 : vector<10x1xf32> to vector<10x98xf32>
    %5 = arith.addf %2, %4 : vector<10x98xf32>
    %cst_5 = arith.constant 0.000000e+00 : f32
    %6 = vector.broadcast %cst_5 : f32 to vector<10x98xf32>
    %7 = arith.maximumf %5, %6 : vector<10x98xf32>
    %c0_6 = arith.constant 0 : index
    %c0_7 = arith.constant 0 : index
    %8 = vector.load %arg3[%c0_6, %c0_7] : memref<10x98xf32, #tpu.memory_space<vmem>>, vector<10x98xf32>
    tpu.vector_store %arg3[%c0_6, %c0_7], %7 {strides = array<i32>} : memref<10x98xf32, #tpu.memory_space<vmem>>, vector<10x98xf32>,
    return
  }
}

module attributes {stable_mosaic.version = 11 : i64} {
  func.func @_mlp_head_kernel(%arg0: memref<2x90xf32, #tpu.memory_space<vmem>>, %arg1: memref<90x32xf32, #tpu.memory_space<vmem>>, %arg2: memref<1x32xf32, #tpu.memory_space<vmem>>, %arg3: memref<32x6xf32, #tpu.memory_space<vmem>>, %arg4: memref<1x6xf32, #tpu.memory_space<vmem>>, %arg5: memref<2x6xf32, #tpu.memory_space<vmem>>) attributes {dimension_semantics = [], scalar_prefetch = 0 : i64, scratch_operands = 0 : i64, tpu.core_type = #tpu.core_type<tc>} {
    %c0 = arith.constant 0 : index
    %c0_0 = arith.constant 0 : index
    %0 = vector.load %arg0[%c0, %c0_0] : memref<2x90xf32, #tpu.memory_space<vmem>>, vector<2x90xf32>
    %c0_1 = arith.constant 0 : index
    %c0_2 = arith.constant 0 : index
    %1 = vector.load %arg1[%c0_1, %c0_2] : memref<90x32xf32, #tpu.memory_space<vmem>>, vector<90x32xf32>
    %cst = arith.constant dense<0.000000e+00> : vector<2x32xf32>
    %2 = tpu.matmul %0, %1, %cst {dimension_numbers = #tpu.dot_dimension_numbers<[1], [0], [0], [1], [0, 0, 1, 1], [], []>} : vector<2x90xf32>, vector<90x32xf32>, vector<2x32xf32> -> vector<2x32xf32>
    %c0_3 = arith.constant 0 : index
    %c0_4 = arith.constant 0 : index
    %3 = vector.load %arg2[%c0_3, %c0_4] : memref<1x32xf32, #tpu.memory_space<vmem>>, vector<1x32xf32>
    %4 = vector.broadcast %3 : vector<1x32xf32> to vector<2x32xf32>
    %5 = arith.addf %2, %4 : vector<2x32xf32>
    %cst_5 = arith.constant 0.000000e+00 : f32
    %6 = vector.broadcast %cst_5 : f32 to vector<2x32xf32>
    %7 = arith.maximumf %5, %6 : vector<2x32xf32>
    %c0_6 = arith.constant 0 : index
    %c0_7 = arith.constant 0 : index
    %8 = vector.load %arg3[%c0_6, %c0_7] : memref<32x6xf32, #tpu.memory_space<vmem>>, vector<32x6xf32>
    %cst_8 = arith.constant dense<0.000000e+00> : vector<2x6xf32>
    %9 = tpu.matmul %7, %8, %cst_8 {dimension_numbers = #tpu.dot_dimension_numbers<[1], [0], [0], [1], [0, 0, 1, 1], [], []>} : vector<2x32xf32>, vector<32x6xf32>, vector<2x6xf32> -> vector<2x6xf32>
    %c0_9 = arith.constant 0 : index
    %c0_10 = arith.constant 0 : index
    %10 = vector.load %arg4[%c0_9, %c0_10] : memref<1x6xf32, #tpu.memory_space<vmem>>, vector<1x6xf32>
    %11 = vector.broadcast %10 : vector<1x6xf32> to vector<2x6xf32>
    %12 = arith.addf %9, %11 : vector<2x6xf32>
    %c0_11 = arith.constant 0 : index
    %c0_12 = arith.constant 0 : index
    %13 = vector.load %arg5[%c0_11, %c0_12] : memref<2x6xf32, #tpu.memory_space<vmem>>, vector<2x6xf32>
    tpu.vector_store %arg5[%c0_11, %c0_12], %12 {strides = array<i32>} : memref<2x6xf32, #tpu.memory_space<vmem>>, vector<2x6xf32>,
    return
  }
}

module attributes {stable_mosaic.version = 11 : i64} {
  func.func @_conv_matmul_kernel(%arg0: memref<10x25xf32, #tpu.memory_space<vmem>>, %arg1: memref<25x1152xf32, #tpu.memory_space<vmem>>, %arg2: memref<10x1xf32, #tpu.memory_space<vmem>>, %arg3: memref<10x1152xf32, #tpu.memory_space<vmem>>) attributes {dimension_semantics = [], scalar_prefetch = 0 : i64, scratch_operands = 0 : i64, tpu.core_type = #tpu.core_type<tc>} {
    %c0 = arith.constant 0 : index
    %c0_0 = arith.constant 0 : index
    %0 = vector.load %arg0[%c0, %c0_0] : memref<10x25xf32, #tpu.memory_space<vmem>>, vector<10x25xf32>
    %c0_1 = arith.constant 0 : index
    %c0_2 = arith.constant 0 : index
    %1 = vector.load %arg1[%c0_1, %c0_2] : memref<25x1152xf32, #tpu.memory_space<vmem>>, vector<25x1152xf32>
    %cst = arith.constant dense<0.000000e+00> : vector<10x1152xf32>
    %2 = tpu.matmul %0, %1, %cst {dimension_numbers = #tpu.dot_dimension_numbers<[1], [0], [0], [1], [0, 0, 1, 1], [], []>} : vector<10x25xf32>, vector<25x1152xf32>, vector<10x1152xf32> -> vector<10x1152xf32>
    %c0_3 = arith.constant 0 : index
    %c0_4 = arith.constant 0 : index
    %3 = vector.load %arg2[%c0_3, %c0_4] : memref<10x1xf32, #tpu.memory_space<vmem>>, vector<10x1xf32>
    %4 = vector.broadcast %3 : vector<10x1xf32> to vector<10x1152xf32>
    %5 = arith.addf %2, %4 : vector<10x1152xf32>
    %cst_5 = arith.constant 0.000000e+00 : f32
    %6 = vector.broadcast %cst_5 : f32 to vector<10x1152xf32>
    %7 = arith.maximumf %5, %6 : vector<10x1152xf32>
    %c0_6 = arith.constant 0 : index
    %c0_7 = arith.constant 0 : index
    %8 = vector.load %arg3[%c0_6, %c0_7] : memref<10x1152xf32, #tpu.memory_space<vmem>>, vector<10x1152xf32>
    tpu.vector_store %arg3[%c0_6, %c0_7], %7 {strides = array<i32>} : memref<10x1152xf32, #tpu.memory_space<vmem>>, vector<10x1152xf32>,
    return
  }
}

module attributes {stable_mosaic.version = 11 : i64} {
  func.func @_conv_matmul_kernel(%arg0: memref<20x250xf32, #tpu.memory_space<vmem>>, %arg1: memref<250x128xf32, #tpu.memory_space<vmem>>, %arg2: memref<20x1xf32, #tpu.memory_space<vmem>>, %arg3: memref<20x128xf32, #tpu.memory_space<vmem>>) attributes {dimension_semantics = [], scalar_prefetch = 0 : i64, scratch_operands = 0 : i64, tpu.core_type = #tpu.core_type<tc>} {
    %c0 = arith.constant 0 : index
    %c0_0 = arith.constant 0 : index
    %0 = vector.load %arg0[%c0, %c0_0] : memref<20x250xf32, #tpu.memory_space<vmem>>, vector<20x250xf32>
    %c0_1 = arith.constant 0 : index
    %c0_2 = arith.constant 0 : index
    %1 = vector.load %arg1[%c0_1, %c0_2] : memref<250x128xf32, #tpu.memory_space<vmem>>, vector<250x128xf32>
    %cst = arith.constant dense<0.000000e+00> : vector<20x128xf32>
    %2 = tpu.matmul %0, %1, %cst {dimension_numbers = #tpu.dot_dimension_numbers<[1], [0], [0], [1], [0, 0, 1, 1], [], []>} : vector<20x250xf32>, vector<250x128xf32>, vector<20x128xf32> -> vector<20x128xf32>
    %c0_3 = arith.constant 0 : index
    %c0_4 = arith.constant 0 : index
    %3 = vector.load %arg2[%c0_3, %c0_4] : memref<20x1xf32, #tpu.memory_space<vmem>>, vector<20x1xf32>
    %4 = vector.broadcast %3 : vector<20x1xf32> to vector<20x128xf32>
    %5 = arith.addf %2, %4 : vector<20x128xf32>
    %cst_5 = arith.constant 0.000000e+00 : f32
    %6 = vector.broadcast %cst_5 : f32 to vector<20x128xf32>
    %7 = arith.maximumf %5, %6 : vector<20x128xf32>
    %c0_6 = arith.constant 0 : index
    %c0_7 = arith.constant 0 : index
    %8 = vector.load %arg3[%c0_6, %c0_7] : memref<20x128xf32, #tpu.memory_space<vmem>>, vector<20x128xf32>
    tpu.vector_store %arg3[%c0_6, %c0_7], %7 {strides = array<i32>} : memref<20x128xf32, #tpu.memory_space<vmem>>, vector<20x128xf32>,
    return
  }
}

module attributes {stable_mosaic.version = 11 : i64} {
  func.func @_mlp_head_kernel(%arg0: memref<2x320xf32, #tpu.memory_space<vmem>>, %arg1: memref<320x50xf32, #tpu.memory_space<vmem>>, %arg2: memref<1x50xf32, #tpu.memory_space<vmem>>, %arg3: memref<50x10xf32, #tpu.memory_space<vmem>>, %arg4: memref<1x10xf32, #tpu.memory_space<vmem>>, %arg5: memref<2x10xf32, #tpu.memory_space<vmem>>) attributes {dimension_semantics = [], scalar_prefetch = 0 : i64, scratch_operands = 0 : i64, tpu.core_type = #tpu.core_type<tc>} {
    %c0 = arith.constant 0 : index
    %c0_0 = arith.constant 0 : index
    %0 = vector.load %arg0[%c0, %c0_0] : memref<2x320xf32, #tpu.memory_space<vmem>>, vector<2x320xf32>
    %c0_1 = arith.constant 0 : index
    %c0_2 = arith.constant 0 : index
    %1 = vector.load %arg1[%c0_1, %c0_2] : memref<320x50xf32, #tpu.memory_space<vmem>>, vector<320x50xf32>
    %cst = arith.constant dense<0.000000e+00> : vector<2x50xf32>
    %2 = tpu.matmul %0, %1, %cst {dimension_numbers = #tpu.dot_dimension_numbers<[1], [0], [0], [1], [0, 0, 1, 1], [], []>} : vector<2x320xf32>, vector<320x50xf32>, vector<2x50xf32> -> vector<2x50xf32>
    %c0_3 = arith.constant 0 : index
    %c0_4 = arith.constant 0 : index
    %3 = vector.load %arg2[%c0_3, %c0_4] : memref<1x50xf32, #tpu.memory_space<vmem>>, vector<1x50xf32>
    %4 = vector.broadcast %3 : vector<1x50xf32> to vector<2x50xf32>
    %5 = arith.addf %2, %4 : vector<2x50xf32>
    %cst_5 = arith.constant 0.000000e+00 : f32
    %6 = vector.broadcast %cst_5 : f32 to vector<2x50xf32>
    %7 = arith.maximumf %5, %6 : vector<2x50xf32>
    %c0_6 = arith.constant 0 : index
    %c0_7 = arith.constant 0 : index
    %8 = vector.load %arg3[%c0_6, %c0_7] : memref<50x10xf32, #tpu.memory_space<vmem>>, vector<50x10xf32>
    %cst_8 = arith.constant dense<0.000000e+00> : vector<2x10xf32>
    %9 = tpu.matmul %7, %8, %cst_8 {dimension_numbers = #tpu.dot_dimension_numbers<[1], [0], [0], [1], [0, 0, 1, 1], [], []>} : vector<2x50xf32>, vector<50x10xf32>, vector<2x10xf32> -> vector<2x10xf32>
    %c0_9 = arith.constant 0 : index
    %c0_10 = arith.constant 0 : index
    %10 = vector.load %arg4[%c0_9, %c0_10] : memref<1x10xf32, #tpu.memory_space<vmem>>, vector<1x10xf32>
    %11 = vector.broadcast %10 : vector<1x10xf32> to vector<2x10xf32>
    %12 = arith.addf %9, %11 : vector<2x10xf32>
    %cst_11 = arith.constant dense<0xFF800000> : vector<2xf32>
    %13 = vector.multi_reduction <maximumf>, %12, %cst_11 [1] : vector<2x10xf32> to vector<2xf32>
    %14 = vector.shape_cast %13 : vector<2xf32> to vector<2x1xf32>
    %15 = vector.broadcast %14 : vector<2x1xf32> to vector<2x10xf32>
    %16 = arith.subf %12, %15 : vector<2x10xf32>
    %17 = math.exp %16 : vector<2x10xf32>
    %cst_12 = arith.constant dense<0.000000e+00> : vector<2xf32>
    %18 = vector.multi_reduction <add>, %17, %cst_12 [1] : vector<2x10xf32> to vector<2xf32>
    %19 = vector.shape_cast %18 : vector<2xf32> to vector<2x1xf32>
    %20 = math.log %19 : vector<2x1xf32>
    %21 = vector.broadcast %20 : vector<2x1xf32> to vector<2x10xf32>
    %22 = arith.subf %16, %21 : vector<2x10xf32>
    %c0_13 = arith.constant 0 : index
    %c0_14 = arith.constant 0 : index
    %23 = vector.load %arg5[%c0_13, %c0_14] : memref<2x10xf32, #tpu.memory_space<vmem>>, vector<2x10xf32>
    tpu.vector_store %arg5[%c0_13, %c0_14], %22 {strides = array<i32>} : memref<2x10xf32, #tpu.memory_space<vmem>>, vector<2x10xf32>,
    return
  }
}

</mosaic_0001>

<bundles_post_ra>
// kernel: forward.6
= control target key start
LH: loop header
LB: loop body
LE: loop exit
PB: predicated region body
PF: predicated region fallthrough
CT: control target
= control target key end

     0   :  { %vm81_vm0 = vcmask 1040384   ;;  %v426_v3 = vmov 0.0   ;;  %vm77_vm1 = vcmask 400384   ;;  %v427_v59 = vmov 0   ;;  %s668_s1 = inlined_call_operand.vmem [shape: f32[49,968], index: 1, kind: input, shape index: {}]   ;;  %s669_s0 = inlined_call_operand.vmem [shape: f32[8,49], index: 0, kind: input, shape index: {}]   ;;  %s670_s2 = inlined_call_operand.vmem [shape: f32[8,1], index: 2, kind: input, shape index: {}]   ;;  %s671_s3 = inlined_call_operand.vmem [shape: f32[8,968], index: 3, kind: output, shape index: {}]  }
   0x1   :  { %v64_v0 = vld [vmem:[%s668_s1 + $0x188] sm:$0x1]  ;;  %v66_v1 = vld [vmem:[%s668_s1 + $0x198] sm:$0x1]  ;;  %v63_v2 = vld [vmem:[%s668_s1 + $0x180] sm:$0x1]  ;;  %170 = vmatprep.mubr.f32.mxu0 %v426_v3  ;;  %241 = vmatprep.mubr.f32.mxu1 %v426_v3 }
   0x2   :  { %411 = vmatprep.subr.msk.mxu0 %vm81_vm0, %v64_v0  ;;  %414 = vmatprep.subr.msk.mxu1 %vm81_vm0, %v66_v1  ;;  %v65_v4 = vld [vmem:[%s668_s1 + $0x190] sm:$0x1]  ;;  %v56_v5 = vld [vmem:[%s668_s1 + $0x148] sm:$0xff]  ;;  %v58_v6 = vld [vmem:[%s668_s1 + $0x158] sm:$0xff]  ;;  %vm405_vm2 = vcmask 588800  }
   0x3   :  { %412 = vmatpush1.msk.msra.mxu0 %vm81_vm0, %v63_v2  ;;  %415 = vmatpush1.msk.msra.mxu1 %vm81_vm0, %v65_v4  ;;  %v55_v7 = vld [vmem:[%s668_s1 + $0x140] sm:$0xff]  ;;  %v57_v8 = vld [vmem:[%s668_s1 + $0x150] sm:$0xff]  ;;  %v48_v9 = vld [vmem:[%s668_s1 + $0x108] sm:$0xff] }
   0x4   :  { %126 = vmatprep.subr.mxu0 %v56_v5  ;;  %197 = vmatprep.subr.mxu1 %v58_v6  ;;  %v50_v10 = vld [vmem:[%s668_s1 + $0x118] sm:$0xff]  ;;  %v47_v11 = vld [vmem:[%s668_s1 + $0x100] sm:$0xff]  ;;  %v49_v12 = vld [vmem:[%s668_s1 + $0x110] sm:$0xff] }
   0x5   :  { %127 = vmatpush1.msra.mxu0 %v55_v7  ;;  %198 = vmatpush1.msra.mxu1 %v57_v8  ;;  %v40_v13 = vld [vmem:[%s668_s1 + $0xc8] sm:$0xff]  ;;  %v42_v14 = vld [vmem:[%s668_s1 + $0xd8] sm:$0xff]  ;;  %v39_v15 = vld [vmem:[%s668_s1 + $0xc0] sm:$0xff] }
   0x6   :  { %128 = vmatprep.subr.mxu0 %v48_v9  ;;  %199 = vmatprep.subr.mxu1 %v50_v10  ;;  %v41_v16 = vld [vmem:[%s668_s1 + $0xd0] sm:$0xff]  ;;  %v32_v17 = vld [vmem:[%s668_s1 + $0x88] sm:$0xff]  ;;  %v34_v18 = vld [vmem:[%s668_s1 + $0x98] sm:$0xff] }
   0x7   :  { %129 = vmatpush1.msra.mxu0 %v47_v11  ;;  %200 = vmatpush1.msra.mxu1 %v49_v12  ;;  %v31_v19 = vld [vmem:[%s668_s1 + $0x80] sm:$0xff]  ;;  %v33_v20 = vld [vmem:[%s668_s1 + $0x90] sm:$0xff]  ;;  %v24_v21 = vld [vmem:[%s668_s1 + $0x48] sm:$0xff] }
   0x8   :  { %130 = vmatprep.subr.mxu0 %v40_v13  ;;  %201 = vmatprep.subr.mxu1 %v42_v14  ;;  %v26_v22 = vld [vmem:[%s668_s1 + $0x58] sm:$0xff]  ;;  %v23_v23 = vld [vmem:[%s668_s1 + $0x40] sm:$0xff]  ;;  %v25_v24 = vld [vmem:[%s668_s1 + $0x50] sm:$0xff] }
   0x9   :  { %131 = vmatpush1.msra.mxu0 %v39_v15  ;;  %202 = vmatpush1.msra.mxu1 %v41_v16  ;;  %v16_v25 = vld [vmem:[%s668_s1 + $0x8] sm:$0xff]  ;;  %v18_v26 = vld [vmem:[%s668_s1 + $0x18] sm:$0xff]  ;;  %v15_v27 = vld [vmem:[%s668_s1] sm:$0xff] }
   0xa   :  { %132 = vmatprep.subr.mxu0 %v32_v17  ;;  %203 = vmatprep.subr.mxu1 %v34_v18  ;;  %v17_v28 = vld [vmem:[%s668_s1 + $0x10] sm:$0xff]  ;;  %v541_v29 = vld [vmem:[%s669_s0] sm:$0xff]  ;;  %v68_v30 = vld [vmem:[%s668_s1 + $0x1a8] sm:$0x1] }
   0xb   :  { %133 = vmatpush1.msra.mxu0 %v31_v19  ;;  %204 = vmatpush1.msra.mxu1 %v33_v20  ;;  %v70_v31 = vld [vmem:[%s668_s1 + $0x1b8] sm:$0x1]  ;;  %v67_v32 = vld [vmem:[%s668_s1 + $0x1a0] sm:$0x1]  ;;  %v69_v33 = vld [vmem:[%s668_s1 + $0x1b0] sm:$0x1] }
   0xc   :  { %134 = vmatprep.subr.mxu0 %v24_v21  ;;  %205 = vmatprep.subr.mxu1 %v26_v22  ;;  %v60_v34 = vld [vmem:[%s668_s1 + $0x168] sm:$0xff]  ;;  %v62_v35 = vld [vmem:[%s668_s1 + $0x178] sm:$0xff]  ;;  %v59_v36 = vld [vmem:[%s668_s1 + $0x160] sm:$0xff] }
   0xd   :  { %135 = vmatpush1.msra.mxu0 %v23_v23  ;;  %206 = vmatpush1.msra.mxu1 %v25_v24  ;;  %v61_v37 = vld [vmem:[%s668_s1 + $0x170] sm:$0xff]  ;;  %v52_v38 = vld [vmem:[%s668_s1 + $0x128] sm:$0xff]  ;;  %v54_v39 = vld [vmem:[%s668_s1 + $0x138] sm:$0xff] }
   0xe   :  { %136 = vmatprep.subr.mxu0 %v16_v25  ;;  %207 = vmatprep.subr.mxu1 %v18_v26  ;;  %v51_v40 = vld [vmem:[%s668_s1 + $0x120] sm:$0xff]  ;;  %v53_v41 = vld [vmem:[%s668_s1 + $0x130] sm:$0xff]  ;;  %v44_v42 = vld [vmem:[%s668_s1 + $0xe8] sm:$0xff] }
   0xf   :  { %137 = vmatpush1.msra.mxu0 %v15_v27  ;;  %208 = vmatpush1.msra.mxu1 %v17_v28  ;;  %v46_v43 = vld [vmem:[%s668_s1 + $0xf8] sm:$0xff]  ;;  %v43_v44 = vld [vmem:[%s668_s1 + $0xe0] sm:$0xff]  ;;  %v45_v45 = vld [vmem:[%s668_s1 + $0xf0] sm:$0xff] }
  0x10   :  { %413 = vmatmul.mubr.msk.f32.vlgmr.msra.gmra.mxu0 %vm77_vm1, %v541_v29  ;;  %416 = vmatmul.mubr.msk.f32.vlgmr.msra.gmra.mxu1 %vm77_vm1, %v541_v29  ;;  %v36_v46 = vld [vmem:[%s668_s1 + $0xa8] sm:$0xff]  ;;  %v38_v47 = vld [vmem:[%s668_s1 + $0xb8] sm:$0xff]  ;;  %v35_v48 = vld [vmem:[%s668_s1 + $0xa0] sm:$0xff] }
  0x11   :  { %417 = vmatprep.subr.msk.mxu0 %vm81_vm0, %v68_v30  ;;  %420 = vmatprep.subr.msk.mxu1 %vm81_vm0, %v70_v31  ;;  %v37_v49 = vld [vmem:[%s668_s1 + $0xb0] sm:$0xff]  ;;  %v28_v50 = vld [vmem:[%s668_s1 + $0x68] sm:$0xff]  ;;  %v30_v51 = vld [vmem:[%s668_s1 + $0x78] sm:$0xff] }
  0x12   :  { %418 = vmatpush1.msk.msra.mxu0 %vm81_vm0, %v67_v32  ;;  %421 = vmatpush1.msk.msra.mxu1 %vm81_vm0, %v69_v33  ;;  %v27_v52 = vld [vmem:[%s668_s1 + $0x60] sm:$0xff]  ;;  %v29_v53 = vld [vmem:[%s668_s1 + $0x70] sm:$0xff]  ;;  %v20_v54 = vld [vmem:[%s668_s1 + $0x28] sm:$0xff] }
  0x13   :  { %268 = vmatprep.subr.mxu0 %v60_v34  ;;  %339 = vmatprep.subr.mxu1 %v62_v35  ;;  %v22_v55 = vld [vmem:[%s668_s1 + $0x38] sm:$0xff]  ;;  %v19_v56 = vld [vmem:[%s668_s1 + $0x20] sm:$0xff]  ;;  %v21_v57 = vld [vmem:[%s668_s1 + $0x30] sm:$0xff] }
  0x14   :  { %269 = vmatpush1.msra.mxu0 %v59_v36  ;;  %340 = vmatpush1.msra.mxu1 %v61_v37  ;;  %v71_v58 = vld [vmem:[%s670_s2] sm:$0xff] }
  0x15   :  { %270 = vmatprep.subr.mxu0 %v52_v38  ;;  %341 = vmatprep.subr.mxu1 %v54_v39 }
  0x16   :  { %271 = vmatpush1.msra.mxu0 %v51_v40  ;;  %342 = vmatpush1.msra.mxu1 %v53_v41 }
  0x17   :  { %272 = vmatprep.subr.mxu0 %v44_v42  ;;  %343 = vmatprep.subr.mxu1 %v46_v43 }
  0x18   :  { %273 = vmatpush1.msra.mxu0 %v43_v44  ;;  %344 = vmatpush1.msra.mxu1 %v45_v45 }
  0x19   :  { %274 = vmatprep.subr.mxu0 %v36_v46  ;;  %345 = vmatprep.subr.mxu1 %v38_v47 }
  0x1a   :  { %275 = vmatpush1.msra.mxu0 %v35_v48  ;;  %346 = vmatpush1.msra.mxu1 %v37_v49 }
  0x1b   :  { %276 = vmatprep.subr.mxu0 %v28_v50  ;;  %347 = vmatprep.subr.mxu1 %v30_v51 }
  0x1c   :  { %277 = vmatpush1.msra.mxu0 %v27_v52  ;;  %348 = vmatpush1.msra.mxu1 %v29_v53 }
  0x1d   :  { %278 = vmatprep.subr.mxu0 %v20_v54  ;;  %349 = vmatprep.subr.mxu1 %v22_v55 }
  0x1e   :  { %279 = vmatpush1.msra.mxu0 %v19_v56  ;;  %312 = vmatprep.mubr.f32.mxu0 %v426_v3 }
  0x1f   :  { %350 = vmatpush1.msra.mxu1 %v21_v57  ;;  %383 = vmatprep.mubr.f32.mxu1 %v426_v3 }
  0x20   :  { %419 = vmatmul.mubr.msk.f32.vlgmr.msra.gmra.mxu0 %vm77_vm1, %v541_v29  ;;  %422 = vmatmul.mubr.msk.f32.vlgmr.msra.gmra.mxu1 %vm77_vm1, %v541_v29 }
  0x21   :  { %425 = vset.pattern.permute.xlu0 %v427_v59 }
  0x22   :  { %74 = vperm.xlu0 %425, %v71_v58  }
  0x9d   :  { %v75_v60 = vpop.permute.xlu0 %74 }
  0xd0   :  { %v172_v61 = vpop.f32.mrf.mxu0  ;;  %v243_v62 = vpop.f32.mrf.mxu1 }
  0xd1   :  { %v173_v63 = vadd.f32 %v172_v61, %v75_v60  ;;  %v244_v0 = vadd.f32 %v243_v62, %v75_v60 }
  0xd2   :  { %v174_v1 = vpop.f32.mrf.mxu0  ;;  %v245_v2 = vpop.f32.mrf.mxu1 }
  0xd3   :  { %v390_v3 = vmax.f32 %v173_v63, 0.0  ;;  %v392_v4 = vmax.f32 %v244_v0, 0.0  ;;  %v175_v5 = vadd.f32 %v174_v1, %v75_v60  ;;  %v246_v6 = vadd.f32 %v245_v2, %v75_v60 }
  0xd5   :  { %398 = vst [vmem:[%s671_s3] sm:$0xff] %v390_v3  ;;  %400 = vst [vmem:[%s671_s3 + $0x10] sm:$0xff] %v392_v4  ;;  %v391_v7 = vmax.f32 %v175_v5, 0.0  ;;  %v393_v8 = vmax.f32 %v246_v6, 0.0 }
  0xd7   :  { %399 = vst [vmem:[%s671_s3 + $0x8] sm:$0xff] %v391_v7  ;;  %401 = vst [vmem:[%s671_s3 + $0x18] sm:$0xff] %v393_v8 }
  0xe0   :  { %v314_v9 = vpop.f32.mrf.mxu0  ;;  %v385_v10 = vpop.f32.mrf.mxu1 }
  0xe1   :  { %v315_v11 = vadd.f32 %v314_v9, %v75_v60  ;;  %v386_v12 = vadd.f32 %v385_v10, %v75_v60 }
  0xe2   :  { %v316_v13 = vpop.f32.mrf.mxu0  ;;  %v387_v14 = vpop.f32.mrf.mxu1 }
  0xe3   :  { %v394_v15 = vmax.f32 %v315_v11, 0.0  ;;  %v396_v16 = vmax.f32 %v386_v12, 0.0  ;;  %v317_v17 = vadd.f32 %v316_v13, %v75_v60  ;;  %v388_v18 = vadd.f32 %v387_v14, %v75_v60 }
  0xe5   :  { %402 = vst [vmem:[%s671_s3 + $0x20] sm:$0xff] %v394_v15  ;;  %404 = vst [vmem:[%s671_s3 + $0x30] sm:$0xff] %v396_v16  ;;  %v395_v19 = vmax.f32 %v317_v17, 0.0  ;;  %v397_v20 = vmax.f32 %v388_v18, 0.0 }
  0xe7   :  { %403 = vst [vmem:[%s671_s3 + $0x28] sm:$0xff] %v395_v19  ;;  %406 = vst.msk [vmem:[%s671_s3 + $0x38] sm:$0xff] %vm405_vm2, %v397_v20 }

// kernel: forward.7
= control target key start
LH: loop header
LB: loop body
LE: loop exit
PB: predicated region body
PF: predicated region fallthrough
CT: control target
= control target key end

     0   :  { %v202_v0 = vmov 0.0   ;;  %vm55_vm0 = vcmask 588800   ;;  %v203_v31 = vmov 0   ;;  %vm139_vm1 = vcmask 801792   ;;  %s373_s1 = inlined_call_operand.vmem [shape: f32[200,98], index: 1, kind: input, shape index: {}]   ;;  %s374_s0 = inlined_call_operand.vmem [shape: f32[10,200], index: 0, kind: input, shape index: {}]   ;;  %s375_s2 = inlined_call_operand.vmem [shape: f32[10,1], index: 2, kind: input, shape index: {}]   ;;  %s376_s3 = inlined_call_operand.vmem [shape: f32[10,98], index: 3, kind: output, shape index: {}]  }
   0x1   :  { %62 = vmatprep.subr.mxu0 %v202_v0  ;;  %149 = vmatprep.subr.mxu1 %v202_v0  ;;  %v33_v1 = vld [vmem:[%s373_s1 + $0x78] sm:$0xff]  ;;  %v32_v2 = vld [vmem:[%s373_s1 + $0x70] sm:$0xff]  ;;  %v31_v3 = vld [vmem:[%s373_s1 + $0x68] sm:$0xff]  ;;  %vm141_vm2 = vcmask 795648  }
   0x2   :  { %63 = vmatpush1.msra.mxu0 %v33_v1  ;;  %174 = vmatpush1.msra.mxu1 %v33_v1  ;;  %v30_v4 = vld [vmem:[%s373_s1 + $0x60] sm:$0xff]  ;;  %v29_v5 = vld [vmem:[%s373_s1 + $0x58] sm:$0xff]  ;;  %v28_v6 = vld [vmem:[%s373_s1 + $0x50] sm:$0xff] }
   0x3   :  { %64 = vmatprep.subr.mxu0 %v202_v0  ;;  %150 = vmatprep.subr.mxu1 %v202_v0  ;;  %v27_v7 = vld [vmem:[%s373_s1 + $0x48] sm:$0xff]  ;;  %v26_v8 = vld [vmem:[%s373_s1 + $0x40] sm:$0xff]  ;;  %v25_v9 = vld [vmem:[%s373_s1 + $0x38] sm:$0xff] }
   0x4   :  { %65 = vmatpush1.msra.mxu0 %v32_v2  ;;  %175 = vmatpush1.msra.mxu1 %v32_v2  ;;  %v24_v10 = vld [vmem:[%s373_s1 + $0x30] sm:$0xff]  ;;  %v23_v11 = vld [vmem:[%s373_s1 + $0x28] sm:$0xff]  ;;  %v22_v12 = vld [vmem:[%s373_s1 + $0x20] sm:$0xff] }
   0x5   :  { %66 = vmatprep.subr.mxu0 %v202_v0  ;;  %151 = vmatprep.subr.mxu1 %v202_v0  ;;  %v21_v13 = vld [vmem:[%s373_s1 + $0x18] sm:$0xff]  ;;  %v20_v14 = vld [vmem:[%s373_s1 + $0x10] sm:$0xff]  ;;  %v19_v15 = vld [vmem:[%s373_s1 + $0x8] sm:$0xff] }
   0x6   :  { %67 = vmatpush1.msra.mxu0 %v31_v3  ;;  %176 = vmatpush1.msra.mxu1 %v31_v3  ;;  %v18_v16 = vld [vmem:[%s373_s1] sm:$0xff]  ;;  %v41_v18 = vld [vmem:[%s373_s1 + $0xb8] sm:$0xff]  ;;  %v40_v19 = vld [vmem:[%s373_s1 + $0xb0] sm:$0xff] }
   0x7   :  { %68 = vmatprep.subr.mxu0 %v202_v0  ;;  %152 = vmatprep.subr.mxu1 %v202_v0  ;;  %v42_v17 = vld [vmem:[%s373_s1 + $0xc0] sm:$0xff]  ;;  %v39_v20 = vld [vmem:[%s373_s1 + $0xa8] sm:$0xff]  ;;  %v37_v22 = vld [vmem:[%s373_s1 + $0x98] sm:$0xff] }
   0x8   :  { %69 = vmatpush1.msra.mxu0 %v30_v4  ;;  %177 = vmatpush1.msra.mxu1 %v30_v4  ;;  %v38_v21 = vld [vmem:[%s373_s1 + $0xa0] sm:$0xff]  ;;  %v36_v23 = vld [vmem:[%s373_s1 + $0x90] sm:$0xff]  ;;  %v35_v24 = vld [vmem:[%s373_s1 + $0x88] sm:$0xff] }
   0x9   :  { %70 = vmatprep.subr.mxu0 %v202_v0  ;;  %153 = vmatprep.subr.mxu1 %v202_v0  ;;  %v34_v25 = vld [vmem:[%s373_s1 + $0x80] sm:$0xff]  ;;  %v15_v26 = vld [vmem:[%s374_s0 + $0x8] sm:$0xff]  ;;  %v17_v27 = vld [vmem:[%s374_s0 + $0x18] sm:$0x3] }
   0xa   :  { %71 = vmatpush1.msra.mxu0 %v29_v5  ;;  %178 = vmatpush1.msra.mxu1 %v29_v5  ;;  %v14_v28 = vld [vmem:[%s374_s0] sm:$0xff]  ;;  %v16_v29 = vld [vmem:[%s374_s0 + $0x10] sm:$0x3]  ;;  %v44_v32 = vld [vmem:[%s375_s2 + $0x8] sm:$0x3] }
   0xb   :  { %72 = vmatprep.subr.mxu0 %v202_v0  ;;  %154 = vmatprep.subr.mxu1 %v202_v0  ;;  %v43_v30 = vld [vmem:[%s375_s2] sm:$0xff] }
   0xc   :  { %73 = vmatpush1.msra.mxu0 %v28_v6  ;;  %179 = vmatpush1.msra.mxu1 %v28_v6 }
   0xd   :  { %74 = vmatprep.subr.mxu0 %v202_v0  ;;  %155 = vmatprep.subr.mxu1 %v202_v0 }
   0xe   :  { %75 = vmatpush1.msra.mxu0 %v27_v7  ;;  %180 = vmatpush1.msra.mxu1 %v27_v7 }
   0xf   :  { %76 = vmatprep.subr.mxu0 %v202_v0  ;;  %156 = vmatprep.subr.mxu1 %v202_v0 }
  0x10   :  { %77 = vmatpush1.msra.mxu0 %v26_v8  ;;  %181 = vmatpush1.msra.mxu1 %v26_v8 }
  0x11   :  { %78 = vmatprep.subr.mxu0 %v202_v0  ;;  %157 = vmatprep.subr.mxu1 %v202_v0 }
  0x12   :  { %79 = vmatpush1.msra.mxu0 %v25_v9  ;;  %182 = vmatpush1.msra.mxu1 %v25_v9 }
  0x13   :  { %80 = vmatprep.subr.mxu0 %v202_v0  ;;  %158 = vmatprep.subr.mxu1 %v202_v0 }
  0x14   :  { %81 = vmatpush1.msra.mxu0 %v24_v10  ;;  %183 = vmatpush1.msra.mxu1 %v24_v10 }
  0x15   :  { %82 = vmatprep.subr.mxu0 %v202_v0  ;;  %159 = vmatprep.subr.mxu1 %v202_v0 }
  0x16   :  { %83 = vmatpush1.msra.mxu0 %v23_v11  ;;  %184 = vmatpush1.msra.mxu1 %v23_v11 }
  0x17   :  { %84 = vmatprep.subr.mxu0 %v202_v0  ;;  %160 = vmatprep.subr.mxu1 %v202_v0 }
  0x18   :  { %85 = vmatpush1.msra.mxu0 %v22_v12  ;;  %185 = vmatpush1.msra.mxu1 %v22_v12 }
  0x19   :  { %86 = vmatprep.subr.mxu0 %v202_v0  ;;  %161 = vmatprep.subr.mxu1 %v202_v0 }
  0x1a   :  { %87 = vmatpush1.msra.mxu0 %v21_v13  ;;  %186 = vmatpush1.msra.mxu1 %v21_v13 }
  0x1b   :  { %88 = vmatprep.subr.mxu0 %v202_v0  ;;  %162 = vmatprep.subr.mxu1 %v202_v0 }
  0x1c   :  { %89 = vmatpush1.msra.mxu0 %v20_v14  ;;  %187 = vmatpush1.msra.mxu1 %v20_v14 }
  0x1d   :  { %90 = vmatprep.subr.mxu0 %v202_v0  ;;  %163 = vmatprep.subr.mxu1 %v202_v0 }
  0x1e   :  { %91 = vmatpush1.msra.mxu0 %v19_v15  ;;  %188 = vmatpush1.msra.mxu1 %v19_v15 }
  0x1f   :  { %92 = vmatprep.subr.mxu0 %v202_v0  ;;  %164 = vmatprep.subr.mxu1 %v202_v0 }
  0x20   :  { %93 = vmatpush1.msra.mxu0 %v18_v16  ;;  %189 = vmatpush1.msra.mxu1 %v18_v16 }
  0x21   :  { %108 = vmatprep.subr.mxu0 %v202_v0  ;;  %165 = vmatprep.subr.mxu1 %v202_v0 }
  0x22   :  { %109 = vmatpush2.msra.mxu0 %v42_v17  ;;  %190 = vmatpush2.msra.mxu1 %v42_v17 }
  0x23   :  { %110 = vmatprep.subr.mxu0 %v202_v0  ;;  %166 = vmatprep.subr.mxu1 %v202_v0 }
  0x24   :  { %111 = vmatpush2.msra.mxu0 %v41_v18  ;;  %191 = vmatpush2.msra.mxu1 %v41_v18 }
  0x25   :  { %112 = vmatprep.subr.mxu0 %v202_v0  ;;  %167 = vmatprep.subr.mxu1 %v202_v0 }
  0x26   :  { %113 = vmatpush2.msra.mxu0 %v40_v19  ;;  %192 = vmatpush2.msra.mxu1 %v40_v19 }
  0x27   :  { %114 = vmatprep.subr.mxu0 %v202_v0  ;;  %168 = vmatprep.subr.mxu1 %v202_v0 }
  0x28   :  { %115 = vmatpush2.msra.mxu0 %v39_v20  ;;  %193 = vmatpush2.msra.mxu1 %v39_v20 }
  0x29   :  { %116 = vmatprep.subr.mxu0 %v202_v0  ;;  %169 = vmatprep.subr.mxu1 %v202_v0 }
  0x2a   :  { %117 = vmatpush2.msra.mxu0 %v38_v21  ;;  %194 = vmatpush2.msra.mxu1 %v38_v21 }
  0x2b   :  { %118 = vmatprep.subr.mxu0 %v202_v0  ;;  %170 = vmatprep.subr.mxu1 %v202_v0 }
  0x2c   :  { %119 = vmatpush2.msra.mxu0 %v37_v22  ;;  %195 = vmatpush2.msra.mxu1 %v37_v22 }
  0x2d   :  { %120 = vmatprep.subr.mxu0 %v202_v0  ;;  %171 = vmatprep.subr.mxu1 %v202_v0 }
  0x2e   :  { %121 = vmatpush2.msra.mxu0 %v36_v23  ;;  %196 = vmatpush2.msra.mxu1 %v36_v23 }
  0x2f   :  { %122 = vmatprep.subr.mxu0 %v202_v0  ;;  %172 = vmatprep.subr.mxu1 %v202_v0 }
  0x30   :  { %123 = vmatpush2.msra.mxu0 %v35_v24  ;;  %197 = vmatpush2.msra.mxu1 %v35_v24 }
  0x31   :  { %124 = vmatprep.subr.mxu0 %v202_v0  ;;  %173 = vmatprep.subr.mxu1 %v202_v0 }
  0x32   :  { %125 = vmatpush2.msra.mxu0 %v34_v25  ;;  %198 = vmatpush2.msra.mxu1 %v34_v25 }
  0x33   :  { %147 = vmatprep.mubr.msk.f32.mxu0 %vm55_vm0, %v15_v26  ;;  %148 = vmatprep.mubr.msk.f32.mxu1 %vm55_vm0, %v17_v27 }
  0x34   :  { %127 = vmatmul.mubr.f32.vlgmr.msra.gmra.mxu0 %v14_v28  ;;  %132 = vmatmul.mubr.f32.vlgmr.msra.gmra.mxu1 %v16_v29 }
  0x35   :  { %201 = vset.pattern.permute.xlu0 %v203_v31 }
  0x36   :  { %47 = vperm.xlu0 %201, %v43_v30  }
  0x3a   :  { %52 = vperm.xlu0 %201, %v44_v32  }
  0xb1   :  { %v48_v33 = vpop.permute.xlu0 %47 }
  0xb5   :  { %v53_v34 = vpop.permute.xlu0 %52 }
  0xf4   :  { %v128_v35 = vpop.f32.mrf.mxu0  ;;  %v133_v36 = vpop.f32.mrf.mxu1 }
  0xf5   :  { %v129_v37 = vadd.f32 %v128_v35, %v48_v33  ;;  %v134_v38 = vadd.f32 %v133_v36, %v53_v34 }
  0xf6   :  { %v130_v39 = vpop.f32.mrf.mxu0  ;;  %v135_v40 = vpop.f32.mrf.mxu1 }
  0xf7   :  { %v137_v41 = vmax.f32 %v129_v37, 0.0  ;;  %v138_v42 = vmax.f32 %v134_v38, 0.0 }
  0xf9   :  { %140 = vst.msk [vmem:[%s376_s3] sm:$0xff] %vm139_vm1, %v137_v41 }
  0xfa   :  { %142 = vst.msk [vmem:[%s376_s3 + $0x8] sm:$0x3] %vm141_vm2, %v138_v42 }

// kernel: forward.8
= control target key start
LH: loop header
LB: loop body
LE: loop exit
PB: predicated region body
PF: predicated region fallthrough
CT: control target
= control target key end

     0   :  { %vm44_vm0 = vcmask 1041408   ;;  %v273_v0 = vmov 0.0   ;;  %vm274_vm1 = vmmov 0   ;;  %vm40_vm2 = vcmask 736256   ;;  %s365_s1 = inlined_call_operand.vmem [shape: f32[90,32], index: 1, kind: input, shape index: {}]   ;;  %s366_s3 = inlined_call_operand.vmem [shape: f32[32,6], index: 3, kind: input, shape index: {}]   ;;  %s367_s0 = inlined_call_operand.vmem [shape: f32[2,90], index: 0, kind: input, shape index: {}]   ;;  %s368_s2 = inlined_call_operand.vmem [shape: f32[1,32], index: 2, kind: input, shape index: {}]   ;;  %s369_s4 = inlined_call_operand.vmem [shape: f32[1,6], index: 4, kind: input, shape index: {}]   ;;  %s370_s5 = inlined_call_operand.vmem [shape: f32[2,6], index: 5, kind: output, shape index: {}]  }
   0x1   :  { %233 = vmatprep.subr.mxu0 %v273_v0  ;;  %v32_v1 = vld [vmem:[%s365_s1 + $0x58] sm:$0x3]  ;;  %v31_v2 = vld [vmem:[%s365_s1 + $0x50] sm:$0xff]  ;;  %257 = vmatprep.mubr.msk.f32.mxu0 %vm274_vm1, %v273_v0  ;;  %v30_v3 = vld [vmem:[%s365_s1 + $0x48] sm:$0xff]  ;;  %vm130_vm3 = vcmask 261120   ;;  %vm204_vm4 = vcmask 41984  }
   0x2   :  { %234 = vmatpush3.msk.msra.mxu0 %vm44_vm0, %v32_v1  ;;  %260 = vmatprep.subr.mxu1 %v273_v0  ;;  %v29_v4 = vld [vmem:[%s365_s1 + $0x40] sm:$0xff]  ;;  %v122_v5 = vld [vmem:[%s366_s3 + $0x18] sm:$0xff]  ;;  %v27_v7 = vld [vmem:[%s365_s1 + $0x30] sm:$0xff] }
   0x3   :  { %235 = vmatprep.subr.mxu0 %v273_v0  ;;  %268 = vmatprep.mubr.msk.f32.mxu1 %vm274_vm1, %v273_v0  ;;  %v28_v6 = vld [vmem:[%s365_s1 + $0x38] sm:$0xff]  ;;  %v26_v8 = vld [vmem:[%s365_s1 + $0x28] sm:$0xff]  ;;  %v25_v9 = vld [vmem:[%s365_s1 + $0x20] sm:$0xff] }
   0x4   :  { %236 = vmatpush3.msra.mxu0 %v31_v2  ;;  %261 = vmatpush3.msra.mxu1 %v122_v5  ;;  %v24_v10 = vld [vmem:[%s365_s1 + $0x18] sm:$0xff]  ;;  %v23_v11 = vld [vmem:[%s365_s1 + $0x10] sm:$0xff]  ;;  %v22_v12 = vld [vmem:[%s365_s1 + $0x8] sm:$0xff] }
   0x5   :  { %237 = vmatprep.subr.mxu0 %v273_v0  ;;  %262 = vmatprep.subr.mxu1 %v273_v0  ;;  %v21_v13 = vld [vmem:[%s365_s1] sm:$0xff]  ;;  %v121_v15 = vld [vmem:[%s366_s3 + $0x10] sm:$0xff]  ;;  %v120_v16 = vld [vmem:[%s366_s3 + $0x8] sm:$0xff] }
   0x6   :  { %238 = vmatpush3.msra.mxu0 %v30_v3  ;;  %v20_v14 = vld [vmem:[%s367_s0] sm:$0x3]  ;;  %263 = vmatpush3.msra.mxu1 %v121_v15 }
   0x7   :  { %239 = vmatprep.subr.mxu0 %v273_v0  ;;  %264 = vmatprep.subr.mxu1 %v273_v0  ;;  %v119_v17 = vld [vmem:[%s366_s3] sm:$0xff] }
   0x8   :  { %240 = vmatpush3.msra.mxu0 %v29_v4  ;;  %265 = vmatpush3.msra.mxu1 %v120_v16  ;;  %v210_v18 = vld [vmem:[%s368_s2] ss:$0 sm:$0xff] }
   0x9   :  { %241 = vmatprep.subr.mxu0 %v273_v0  ;;  %266 = vmatprep.subr.mxu1 %v273_v0  ;;  %v213_v23 = vld [vmem:[%s369_s4] ss:$0 sm:$0xff] }
   0xa   :  { %242 = vmatpush3.msra.mxu0 %v28_v6  ;;  %267 = vmatpush3.msra.mxu1 %v119_v17 }
   0xb   :  { %243 = vmatprep.subr.mxu0 %v273_v0 }
   0xc   :  { %244 = vmatpush3.msra.mxu0 %v27_v7 }
   0xd   :  { %245 = vmatprep.subr.mxu0 %v273_v0 }
   0xe   :  { %246 = vmatpush3.msra.mxu0 %v26_v8 }
   0xf   :  { %247 = vmatprep.subr.mxu0 %v273_v0 }
  0x10   :  { %248 = vmatpush3.msra.mxu0 %v25_v9 }
  0x11   :  { %249 = vmatprep.subr.mxu0 %v273_v0 }
  0x12   :  { %250 = vmatpush3.msra.mxu0 %v24_v10 }
  0x13   :  { %251 = vmatprep.subr.mxu0 %v273_v0 }
  0x14   :  { %252 = vmatpush3.msra.mxu0 %v23_v11 }
  0x15   :  { %253 = vmatprep.subr.mxu0 %v273_v0 }
  0x16   :  { %254 = vmatpush3.msra.mxu0 %v22_v12 }
  0x17   :  { %255 = vmatprep.subr.mxu0 %v273_v0 }
  0x18   :  { %256 = vmatpush3.msra.mxu0 %v21_v13 }
  0x19   :  { %258 = vmatmul.mubr.msk.f32.vlgmr.msra.gmra.mxu0 %vm40_vm2, %v20_v14 }
  0xd9   :  { %v114_v19 = vpop.f32.mrf.mxu0 }
  0xda   :  { %v115_v20 = vadd.f32 %v210_v18, %v114_v19 }
  0xdb   :  { %v259_v21 = vpop.f32.mrf.mxu0 }
  0xdc   :  { %v118_v22 = vmax.f32 %v115_v20, 0.0 }
  0xde   :  { %269 = vmatmul.mubr.msk.f32.vlgmr.msra.gmra.mxu1 %vm130_vm3, %v118_v22 }
 0x19e   :  { %v200_v24 = vpop.f32.mrf.mxu1 }
 0x19f   :  { %v201_v25 = vadd.f32 %v213_v23, %v200_v24 }
 0x1a0   :  { %v270_v26 = vpop.f32.mrf.mxu1 }
 0x1a1   :  { %205 = vst.msk [vmem:[%s370_s5] sm:$0x3] %vm204_vm4, %v201_v25 }

// kernel: forward.9
= control target key start
LH: loop header
LB: loop body
LE: loop exit
PB: predicated region body
PF: predicated region fallthrough
CT: control target
= control target key end

     0   :  { %vm71_vm0 = vcmask 1040384   ;;  %v561_v3 = vmov 0.0   ;;  %vm64_vm1 = vcmask 203776   ;;  %v562_v40 = vmov 0   ;;  %s803_s1 = inlined_call_operand.vmem [shape: f32[25,1152], index: 1, kind: input, shape index: {}]   ;;  %s804_s0 = inlined_call_operand.vmem [shape: f32[10,25], index: 0, kind: input, shape index: {}]   ;;  %s805_s2 = inlined_call_operand.vmem [shape: f32[10,1], index: 2, kind: input, shape index: {}]   ;;  %s806_s3 = inlined_call_operand.vmem [shape: f32[10,1152], index: 3, kind: output, shape index: {}]  }
   0x1   :  { %v44_v0 = vld [vmem:[%s803_s1 + $0xe0] sm:$0x1]  ;;  %v43_v1 = vld [vmem:[%s803_s1 + $0xd8] sm:$0x1]  ;;  %v46_v2 = vld [vmem:[%s803_s1 + $0xf0] sm:$0x1]  ;;  %163 = vmatprep.mubr.f32.mxu0 %v561_v3  ;;  %240 = vmatprep.mubr.f32.mxu1 %v561_v3 }
   0x2   :  { %522 = vmatprep.subr.msk.mxu0 %vm71_vm0, %v44_v0  ;;  %526 = vmatprep.subr.msk.mxu1 %vm71_vm0, %v46_v2  ;;  %v35_v4 = vld [vmem:[%s803_s1 + $0x98] sm:$0xff]  ;;  %v45_v5 = vld [vmem:[%s803_s1 + $0xe8] sm:$0x1]  ;;  %v34_v6 = vld [vmem:[%s803_s1 + $0x90] sm:$0xff] }
   0x3   :  { %523 = vmatpush1.msk.msra.mxu0 %vm71_vm0, %v43_v1  ;;  %527 = vmatpush1.msk.msra.mxu1 %vm71_vm0, %v45_v5  ;;  %v37_v7 = vld [vmem:[%s803_s1 + $0xa8] sm:$0xff]  ;;  %v26_v8 = vld [vmem:[%s803_s1 + $0x50] sm:$0xff]  ;;  %v36_v9 = vld [vmem:[%s803_s1 + $0xa0] sm:$0xff] }
   0x4   :  { %125 = vmatprep.subr.mxu0 %v35_v4  ;;  %202 = vmatprep.subr.mxu1 %v37_v7  ;;  %v25_v10 = vld [vmem:[%s803_s1 + $0x48] sm:$0xff]  ;;  %v28_v11 = vld [vmem:[%s803_s1 + $0x60] sm:$0xff]  ;;  %v27_v13 = vld [vmem:[%s803_s1 + $0x58] sm:$0xff] }
   0x5   :  { %126 = vmatpush1.msra.mxu0 %v34_v6  ;;  %203 = vmatpush1.msra.mxu1 %v36_v9  ;;  %v17_v12 = vld [vmem:[%s803_s1 + $0x8] sm:$0xff]  ;;  %v19_v14 = vld [vmem:[%s803_s1 + $0x18] sm:$0xff]  ;;  %v16_v15 = vld [vmem:[%s803_s1] sm:$0xff] }
   0x6   :  { %127 = vmatprep.subr.mxu0 %v26_v8  ;;  %204 = vmatprep.subr.mxu1 %v28_v11  ;;  %v18_v16 = vld [vmem:[%s803_s1 + $0x10] sm:$0xff]  ;;  %v640_v17 = vld [vmem:[%s804_s0] sm:$0xff]  ;;  %v47_v19 = vld [vmem:[%s803_s1 + $0xf8] sm:$0x1] }
   0x7   :  { %128 = vmatpush1.msra.mxu0 %v25_v10  ;;  %205 = vmatpush1.msra.mxu1 %v27_v13  ;;  %v48_v18 = vld [vmem:[%s803_s1 + $0x100] sm:$0x1]  ;;  %v50_v20 = vld [vmem:[%s803_s1 + $0x110] sm:$0x1]  ;;  %v39_v21 = vld [vmem:[%s803_s1 + $0xb8] sm:$0xff] }
   0x8   :  { %129 = vmatprep.subr.mxu0 %v17_v12  ;;  %206 = vmatprep.subr.mxu1 %v19_v14  ;;  %v49_v22 = vld [vmem:[%s803_s1 + $0x108] sm:$0x1]  ;;  %v38_v23 = vld [vmem:[%s803_s1 + $0xb0] sm:$0xff]  ;;  %v40_v27 = vld [vmem:[%s803_s1 + $0xc0] sm:$0xff] }
   0x9   :  { %130 = vmatpush1.msra.mxu0 %v16_v15  ;;  %207 = vmatpush1.msra.mxu1 %v18_v16  ;;  %v41_v24 = vld [vmem:[%s803_s1 + $0xc8] sm:$0xff]  ;;  %v30_v26 = vld [vmem:[%s803_s1 + $0x70] sm:$0xff]  ;;  %v32_v29 = vld [vmem:[%s803_s1 + $0x80] sm:$0xff] }
   0xa   :  { %524 = vmatmul.mubr.msk.f32.vlgmr.msra.gmra.mxu0 %vm64_vm1, %v640_v17  ;;  %530 = vmatprep.subr.msk.mxu0 %vm71_vm0, %v48_v18  ;;  %v15_v25 = vld [vmem:[%s804_s0 + $0x8] sm:$0x3]  ;;  %v31_v31 = vld [vmem:[%s803_s1 + $0x78] sm:$0xff]  ;;  %v20_v32 = vld [vmem:[%s803_s1 + $0x20] sm:$0xff] }
   0xb   :  { %528 = vmatmul.mubr.msk.f32.vlgmr.msra.gmra.mxu1 %vm64_vm1, %v640_v17  ;;  %531 = vmatpush1.msk.msra.mxu0 %vm71_vm0, %v47_v19  ;;  %v29_v28 = vld [vmem:[%s803_s1 + $0x68] sm:$0xff]  ;;  %v23_v33 = vld [vmem:[%s803_s1 + $0x38] sm:$0xff]  ;;  %v22_v34 = vld [vmem:[%s803_s1 + $0x30] sm:$0xff] }
   0xc   :  { %534 = vmatprep.subr.msk.mxu1 %vm71_vm0, %v50_v20  ;;  %279 = vmatprep.subr.mxu0 %v39_v21  ;;  %v21_v30 = vld [vmem:[%s803_s1 + $0x28] sm:$0xff]  ;;  %v51_v35 = vld [vmem:[%s803_s1 + $0x118] sm:$0x1]  ;;  %v42_v36 = vld [vmem:[%s803_s1 + $0xd0] sm:$0xff] }
   0xd   :  { %535 = vmatpush1.msk.msra.mxu1 %vm71_vm0, %v49_v22  ;;  %169 = vmatprep.mubr.f32.mxu0 %v561_v3  ;;  %v33_v37 = vld [vmem:[%s803_s1 + $0x88] sm:$0xff]  ;;  %v24_v38 = vld [vmem:[%s803_s1 + $0x40] sm:$0xff] }
   0xe   :  { %280 = vmatpush1.msra.mxu0 %v38_v23  ;;  %356 = vmatprep.subr.mxu1 %v41_v24  ;;  %v52_v39 = vld [vmem:[%s805_s2] sm:$0xff]  ;;  %v53_v41 = vld [vmem:[%s805_s2 + $0x8] sm:$0x3] }
   0xf   :  { %525 = vmatmul.mubr.msk.f32.gmra.mxu0 %vm64_vm1, %v15_v25  ;;  %246 = vmatprep.mubr.f32.mxu1 %v561_v3 }
  0x10   :  { %281 = vmatprep.subr.mxu0 %v30_v26  ;;  %357 = vmatpush1.msra.mxu1 %v40_v27 }
  0x11   :  { %529 = vmatmul.mubr.msk.f32.gmra.mxu1 %vm64_vm1, %v15_v25  ;;  %282 = vmatpush1.msra.mxu0 %v29_v28 }
  0x12   :  { %358 = vmatprep.subr.mxu1 %v32_v29  ;;  %283 = vmatprep.subr.mxu0 %v21_v30 }
  0x13   :  { %359 = vmatpush1.msra.mxu1 %v31_v31  ;;  %284 = vmatpush1.msra.mxu0 %v20_v32 }
  0x14   :  { %317 = vmatprep.mubr.f32.mxu0 %v561_v3  ;;  %360 = vmatprep.subr.mxu1 %v23_v33 }
  0x15   :  { %532 = vmatmul.mubr.msk.f32.vlgmr.msra.gmra.mxu0 %vm64_vm1, %v640_v17  ;;  %361 = vmatpush1.msra.mxu1 %v22_v34 }
  0x16   :  { %394 = vmatprep.mubr.f32.mxu1 %v561_v3  ;;  %547 = vmatprep.subr.msk.mxu0 %vm71_vm0, %v51_v35 }
  0x17   :  { %536 = vmatmul.mubr.msk.f32.vlgmr.msra.gmra.mxu1 %vm64_vm1, %v640_v17  ;;  %548 = vmatpush3.msk.msra.mxu0 %vm71_vm0, %v51_v35 }
  0x18   :  { %549 = vmatprep.subr.mxu0 %v42_v36  ;;  %323 = vmatprep.mubr.f32.mxu0 %v561_v3 }
  0x19   :  { %550 = vmatpush3.msra.mxu0 %v42_v36  ;;  %400 = vmatprep.mubr.f32.mxu1 %v561_v3 }
  0x1a   :  { %533 = vmatmul.mubr.msk.f32.gmra.mxu0 %vm64_vm1, %v15_v25  ;;  %551 = vmatprep.subr.mxu0 %v33_v37 }
  0x1b   :  { %537 = vmatmul.mubr.msk.f32.gmra.mxu1 %vm64_vm1, %v15_v25  ;;  %552 = vmatpush3.msra.mxu0 %v33_v37 }
  0x1c   :  { %553 = vmatprep.subr.mxu0 %v24_v38  ;;  %555 = vmatprep.mubr.msk.f32.mxu0 %vm64_vm1, %v640_v17 }
  0x1d   :  { %554 = vmatpush3.msra.mxu0 %v24_v38  ;;  %560 = vset.pattern.permute.xlu0 %v562_v40 }
  0x1e   :  { %556 = vmatmul.mubr.msk.f32.vlgmr.msra.gmra.mxu0 %vm64_vm1, %v15_v25  ;;  %56 = vperm.xlu0 %560, %v52_v39  }
  0x22   :  { %61 = vperm.xlu0 %560, %v53_v41  }
  0x99   :  { %v738_v42 = vpop.permute.xlu0 %56 }
  0x9d   :  { %v62_v51 = vpop.permute.xlu0 %61 }
  0xca   :  { %v165_v43 = vpop.f32.mrf.mxu0 }
  0xcb   :  { %v166_v44 = vadd.f32 %v165_v43, %v738_v42  ;;  %v242_v45 = vpop.f32.mrf.mxu1 }
  0xcc   :  { %v243_v46 = vadd.f32 %v242_v45, %v738_v42  ;;  %v167_v47 = vpop.f32.mrf.mxu0 }
  0xcd   :  { %v482_v48 = vmax.f32 %v166_v44, 0.0  ;;  %v168_v49 = vadd.f32 %v167_v47, %v738_v42  ;;  %v244_v50 = vpop.f32.mrf.mxu1 }
  0xce   :  { %v484_v52 = vmax.f32 %v243_v46, 0.0  ;;  %v245_v53 = vadd.f32 %v244_v50, %v738_v42 }
  0xcf   :  { %500 = vst [vmem:[%s806_s3] sm:$0xff] %v482_v48  ;;  %v483_v54 = vmax.f32 %v168_v49, 0.0  ;;  %v171_v55 = vpop.f32.mrf.mxu0 }
  0xd0   :  { %502 = vst [vmem:[%s806_s3 + $0x10] sm:$0xff] %v484_v52  ;;  %v485_v56 = vmax.f32 %v245_v53, 0.0  ;;  %v172_v57 = vadd.f32 %v171_v55, %v62_v51 }
  0xd1   :  { %501 = vst [vmem:[%s806_s3 + $0x8] sm:$0xff] %v483_v54  ;;  %v248_v58 = vpop.f32.mrf.mxu1  ;;  %v173_v59 = vpop.f32.mrf.mxu0 }
  0xd2   :  { %503 = vst [vmem:[%s806_s3 + $0x18] sm:$0xff] %v485_v56  ;;  %v491_v60 = vmax.f32 %v172_v57, 0.0  ;;  %v249_v61 = vadd.f32 %v248_v58, %v62_v51  ;;  %v174_v62 = vadd.f32 %v173_v59, %v62_v51 }
  0xd3   :  { %v250_v63 = vpop.f32.mrf.mxu1 }
  0xd4   :  { %509 = vst [vmem:[%s806_s3 + $0x48] sm:$0x3] %v491_v60  ;;  %v493_v0 = vmax.f32 %v249_v61, 0.0  ;;  %v492_v1 = vmax.f32 %v174_v62, 0.0  ;;  %v251_v2 = vadd.f32 %v250_v63, %v62_v51 }
  0xd5   :  { %v319_v3 = vpop.f32.mrf.mxu0 }
  0xd6   :  { %511 = vst [vmem:[%s806_s3 + $0x58] sm:$0x3] %v493_v0  ;;  %510 = vst [vmem:[%s806_s3 + $0x50] sm:$0x3] %v492_v1  ;;  %v494_v4 = vmax.f32 %v251_v2, 0.0  ;;  %v320_v5 = vadd.f32 %v319_v3, %v738_v42 }
  0xd7   :  { %v396_v6 = vpop.f32.mrf.mxu1  ;;  %v321_v7 = vpop.f32.mrf.mxu0 }
  0xd8   :  { %512 = vst [vmem:[%s806_s3 + $0x60] sm:$0x3] %v494_v4  ;;  %v486_v8 = vmax.f32 %v320_v5, 0.0  ;;  %v397_v9 = vadd.f32 %v396_v6, %v738_v42  ;;  %v322_v10 = vadd.f32 %v321_v7, %v738_v42 }
  0xd9   :  { %v398_v11 = vpop.f32.mrf.mxu1 }
  0xda   :  { %504 = vst [vmem:[%s806_s3 + $0x20] sm:$0xff] %v486_v8  ;;  %v488_v12 = vmax.f32 %v397_v9, 0.0  ;;  %v487_v13 = vmax.f32 %v322_v10, 0.0  ;;  %v399_v14 = vadd.f32 %v398_v11, %v738_v42  ;;  %v325_v15 = vpop.f32.mrf.mxu0 }
  0xdb   :  { %v326_v16 = vadd.f32 %v325_v15, %v62_v51  ;;  %v402_v17 = vpop.f32.mrf.mxu1 }
  0xdc   :  { %506 = vst [vmem:[%s806_s3 + $0x30] sm:$0xff] %v488_v12  ;;  %505 = vst [vmem:[%s806_s3 + $0x28] sm:$0xff] %v487_v13  ;;  %v489_v18 = vmax.f32 %v399_v14, 0.0  ;;  %v403_v19 = vadd.f32 %v402_v17, %v62_v51  ;;  %v327_v20 = vpop.f32.mrf.mxu0 }
  0xdd   :  { %v495_v21 = vmax.f32 %v326_v16, 0.0  ;;  %v328_v22 = vadd.f32 %v327_v20, %v62_v51  ;;  %v404_v23 = vpop.f32.mrf.mxu1 }
  0xde   :  { %507 = vst [vmem:[%s806_s3 + $0x38] sm:$0xff] %v489_v18  ;;  %v497_v24 = vmax.f32 %v403_v19, 0.0  ;;  %v405_v25 = vadd.f32 %v404_v23, %v62_v51  ;;  %v557_v26 = vpop.f32.mrf.mxu0 }
  0xdf   :  { %513 = vst [vmem:[%s806_s3 + $0x68] sm:$0x3] %v495_v21  ;;  %v496_v27 = vmax.f32 %v328_v22, 0.0  ;;  %v479_v28 = vadd.f32 %v557_v26, %v62_v51 }
  0xe0   :  { %515 = vst [vmem:[%s806_s3 + $0x78] sm:$0x3] %v497_v24  ;;  %v498_v29 = vmax.f32 %v405_v25, 0.0  ;;  %v473_v30 = vpop.f32.mrf.mxu0 }
  0xe1   :  { %514 = vst [vmem:[%s806_s3 + $0x70] sm:$0x3] %v496_v27  ;;  %v499_v31 = vmax.f32 %v479_v28, 0.0  ;;  %v474_v32 = vadd.f32 %v473_v30, %v738_v42 }
  0xe2   :  { %516 = vst [vmem:[%s806_s3 + $0x80] sm:$0x3] %v498_v29 }
  0xe3   :  { %517 = vst [vmem:[%s806_s3 + $0x88] sm:$0x3] %v499_v31  ;;  %v490_v33 = vmax.f32 %v474_v32, 0.0 }
  0xe5   :  { %508 = vst [vmem:[%s806_s3 + $0x40] sm:$0xff] %v490_v33 }

// kernel: forward.10
= control target key start
LH: loop header
LB: loop body
LE: loop exit
PB: predicated region body
PF: predicated region fallthrough
CT: control target
= control target key end

     0   :  { %vm80_vm0 = vcmask 1041408   ;;  %v254_v3 = vmov 0   ;;  %vm70_vm1 = vcmask 998400   ;;  %s407_s1 = inlined_call_operand.vmem [shape: f32[250,128], index: 1, kind: input, shape index: {}]   ;;  %s408_s0 = inlined_call_operand.vmem [shape: f32[20,250], index: 0, kind: input, shape index: {}]   ;;  %s409_s2 = inlined_call_operand.vmem [shape: f32[20,1], index: 2, kind: input, shape index: {}]   ;;  %s410_s3 = inlined_call_operand.vmem [shape: f32[20,128], index: 3, kind: output, shape index: {}]  }
   0x1   :  { %v51_v0 = vld [vmem:[%s407_s1 + $0xf8] sm:$0x3]  ;;  %v50_v2 = vld [vmem:[%s407_s1 + $0xf0] sm:$0xff]  ;;  %252 = vset.pattern.permute.xlu0 %v254_v3  ;;  %253 = vset.pattern.permute.xlu1 %v254_v3  ;;  %v49_v5 = vld [vmem:[%s407_s1 + $0xe8] sm:$0xff] }
   0x2   :  { %v35_v1 = vld [vmem:[%s407_s1 + $0x78] sm:$0xff]  ;;  %178 = vmatprep.subr.msk.mxu0 %vm80_vm0, %v51_v0  ;;  %219 = vmatprep.subr.msk.mxu1 %vm80_vm0, %v51_v0  ;;  %v34_v4 = vld [vmem:[%s407_s1 + $0x70] sm:$0xff]  ;;  %v33_v6 = vld [vmem:[%s407_s1 + $0x68] sm:$0xff] }
   0x3   :  { %179 = vmatpush3.msra.mxu0 %v35_v1  ;;  %235 = vmatpush3.msra.mxu1 %v35_v1  ;;  %v48_v7 = vld [vmem:[%s407_s1 + $0xe0] sm:$0xff]  ;;  %v47_v9 = vld [vmem:[%s407_s1 + $0xd8] sm:$0xff]  ;;  %v46_v11 = vld [vmem:[%s407_s1 + $0xd0] sm:$0xff] }
   0x4   :  { %180 = vmatprep.subr.mxu0 %v50_v2  ;;  %220 = vmatprep.subr.mxu1 %v50_v2  ;;  %v32_v8 = vld [vmem:[%s407_s1 + $0x60] sm:$0xff]  ;;  %v31_v10 = vld [vmem:[%s407_s1 + $0x58] sm:$0xff]  ;;  %v30_v12 = vld [vmem:[%s407_s1 + $0x50] sm:$0xff] }
   0x5   :  { %181 = vmatpush3.msra.mxu0 %v34_v4  ;;  %236 = vmatpush3.msra.mxu1 %v34_v4  ;;  %v45_v13 = vld [vmem:[%s407_s1 + $0xc8] sm:$0xff]  ;;  %v44_v15 = vld [vmem:[%s407_s1 + $0xc0] sm:$0xff]  ;;  %v43_v17 = vld [vmem:[%s407_s1 + $0xb8] sm:$0xff] }
   0x6   :  { %182 = vmatprep.subr.mxu0 %v49_v5  ;;  %221 = vmatprep.subr.mxu1 %v49_v5  ;;  %v29_v14 = vld [vmem:[%s407_s1 + $0x48] sm:$0xff]  ;;  %v28_v16 = vld [vmem:[%s407_s1 + $0x40] sm:$0xff]  ;;  %v27_v18 = vld [vmem:[%s407_s1 + $0x38] sm:$0xff] }
   0x7   :  { %183 = vmatpush3.msra.mxu0 %v33_v6  ;;  %237 = vmatpush3.msra.mxu1 %v33_v6  ;;  %v42_v19 = vld [vmem:[%s407_s1 + $0xb0] sm:$0xff]  ;;  %v41_v21 = vld [vmem:[%s407_s1 + $0xa8] sm:$0xff]  ;;  %v40_v23 = vld [vmem:[%s407_s1 + $0xa0] sm:$0xff] }
   0x8   :  { %184 = vmatprep.subr.mxu0 %v48_v7  ;;  %222 = vmatprep.subr.mxu1 %v48_v7  ;;  %v26_v20 = vld [vmem:[%s407_s1 + $0x30] sm:$0xff]  ;;  %v25_v22 = vld [vmem:[%s407_s1 + $0x28] sm:$0xff]  ;;  %v24_v24 = vld [vmem:[%s407_s1 + $0x20] sm:$0xff] }
   0x9   :  { %185 = vmatpush3.msra.mxu0 %v32_v8  ;;  %238 = vmatpush3.msra.mxu1 %v32_v8  ;;  %v39_v25 = vld [vmem:[%s407_s1 + $0x98] sm:$0xff]  ;;  %v38_v27 = vld [vmem:[%s407_s1 + $0x90] sm:$0xff]  ;;  %v37_v29 = vld [vmem:[%s407_s1 + $0x88] sm:$0xff] }
   0xa   :  { %186 = vmatprep.subr.mxu0 %v47_v9  ;;  %223 = vmatprep.subr.mxu1 %v47_v9  ;;  %v23_v26 = vld [vmem:[%s407_s1 + $0x18] sm:$0xff]  ;;  %v22_v28 = vld [vmem:[%s407_s1 + $0x10] sm:$0xff]  ;;  %v21_v30 = vld [vmem:[%s407_s1 + $0x8] sm:$0xff] }
   0xb   :  { %187 = vmatpush3.msra.mxu0 %v31_v10  ;;  %239 = vmatpush3.msra.mxu1 %v31_v10  ;;  %v36_v31 = vld [vmem:[%s407_s1 + $0x80] sm:$0xff]  ;;  %v15_v33 = vld [vmem:[%s408_s0 + $0x8] sm:$0xff]  ;;  %v17_v34 = vld [vmem:[%s408_s0 + $0x18] sm:$0xff] }
   0xc   :  { %188 = vmatprep.subr.mxu0 %v46_v11  ;;  %224 = vmatprep.subr.mxu1 %v46_v11  ;;  %v20_v32 = vld [vmem:[%s407_s1] sm:$0xff]  ;;  %v16_v36 = vld [vmem:[%s408_s0 + $0x10] sm:$0xff]  ;;  %v19_v37 = vld [vmem:[%s408_s0 + $0x28] sm:$0xf] }
   0xd   :  { %189 = vmatpush3.msra.mxu0 %v30_v12  ;;  %240 = vmatpush3.msra.mxu1 %v30_v12  ;;  %v14_v35 = vld [vmem:[%s408_s0] sm:$0xff]  ;;  %v54_v39 = vld [vmem:[%s409_s2 + $0x10] sm:$0xf]  ;;  %v53_v41 = vld [vmem:[%s409_s2 + $0x8] sm:$0xff] }
   0xe   :  { %190 = vmatprep.subr.mxu0 %v45_v13  ;;  %225 = vmatprep.subr.mxu1 %v45_v13  ;;  %v52_v38 = vld [vmem:[%s409_s2] sm:$0xff] }
   0xf   :  { %191 = vmatpush3.msra.mxu0 %v29_v14  ;;  %241 = vmatpush3.msra.mxu1 %v29_v14  ;;  %v18_v40 = vld [vmem:[%s408_s0 + $0x20] sm:$0xf] }
  0x10   :  { %192 = vmatprep.subr.mxu0 %v44_v15  ;;  %226 = vmatprep.subr.mxu1 %v44_v15 }
  0x11   :  { %193 = vmatpush3.msra.mxu0 %v28_v16  ;;  %242 = vmatpush3.msra.mxu1 %v28_v16 }
  0x12   :  { %194 = vmatprep.subr.mxu0 %v43_v17  ;;  %227 = vmatprep.subr.mxu1 %v43_v17 }
  0x13   :  { %195 = vmatpush3.msra.mxu0 %v27_v18  ;;  %243 = vmatpush3.msra.mxu1 %v27_v18 }
  0x14   :  { %196 = vmatprep.subr.mxu0 %v42_v19  ;;  %228 = vmatprep.subr.mxu1 %v42_v19 }
  0x15   :  { %197 = vmatpush3.msra.mxu0 %v26_v20  ;;  %244 = vmatpush3.msra.mxu1 %v26_v20 }
  0x16   :  { %198 = vmatprep.subr.mxu0 %v41_v21  ;;  %229 = vmatprep.subr.mxu1 %v41_v21 }
  0x17   :  { %199 = vmatpush3.msra.mxu0 %v25_v22  ;;  %245 = vmatpush3.msra.mxu1 %v25_v22 }
  0x18   :  { %200 = vmatprep.subr.mxu0 %v40_v23  ;;  %230 = vmatprep.subr.mxu1 %v40_v23 }
  0x19   :  { %201 = vmatpush3.msra.mxu0 %v24_v24  ;;  %246 = vmatpush3.msra.mxu1 %v24_v24 }
  0x1a   :  { %202 = vmatprep.subr.mxu0 %v39_v25  ;;  %231 = vmatprep.subr.mxu1 %v39_v25 }
  0x1b   :  { %203 = vmatpush3.msra.mxu0 %v23_v26  ;;  %247 = vmatpush3.msra.mxu1 %v23_v26 }
  0x1c   :  { %204 = vmatprep.subr.mxu0 %v38_v27  ;;  %232 = vmatprep.subr.mxu1 %v38_v27 }
  0x1d   :  { %205 = vmatpush3.msra.mxu0 %v22_v28  ;;  %248 = vmatpush3.msra.mxu1 %v22_v28 }
  0x1e   :  { %206 = vmatprep.subr.mxu0 %v37_v29  ;;  %233 = vmatprep.subr.mxu1 %v37_v29 }
  0x1f   :  { %207 = vmatpush3.msra.mxu0 %v21_v30  ;;  %249 = vmatpush3.msra.mxu1 %v21_v30 }
  0x20   :  { %208 = vmatprep.subr.mxu0 %v36_v31  ;;  %234 = vmatprep.subr.mxu1 %v36_v31 }
  0x21   :  { %209 = vmatpush3.msra.mxu0 %v20_v32  ;;  %250 = vmatpush3.msra.mxu1 %v20_v32 }
  0x22   :  { %175 = vmatprep.mubr.msk.f32.mxu0 %vm70_vm1, %v15_v33  ;;  %176 = vmatprep.mubr.msk.f32.mxu1 %vm70_vm1, %v17_v34 }
  0x23   :  { %149 = vmatmul.mubr.f32.vlgmr.msra.gmra.mxu0 %v14_v35  ;;  %154 = vmatmul.mubr.f32.vlgmr.msra.gmra.mxu1 %v16_v36 }
  0x24   :  { %177 = vmatprep.mubr.msk.f32.mxu1 %vm70_vm1, %v19_v37  ;;  %57 = vperm.xlu0 %252, %v52_v38  }
  0x25   :  { %67 = vperm.xlu1 %253, %v54_v39  }
  0x27   :  { %159 = vmatmul.mubr.f32.gmra.mxu1 %v18_v40 }
  0x28   :  { %62 = vperm.xlu0 %252, %v53_v41  }
  0x9f   :  { %v58_v42 = vpop.permute.xlu0 %57 }
  0xa0   :  { %v68_v54 = vpop.permute.xlu1 %67 }
  0xa3   :  { %v63_v45 = vpop.permute.xlu0 %62 }
  0xe3   :  { %v210_v43 = vpop.f32.mrf.mxu0  ;;  %v213_v44 = vpop.f32.mrf.mxu1 }
  0xe5   :  { %v211_v46 = vpop.f32.mrf.mxu0  ;;  %v214_v47 = vpop.f32.mrf.mxu1 }
  0xe6   :  { %v212_v48 = vadd.f32 %v211_v46, %v210_v43  ;;  %v215_v49 = vadd.f32 %v214_v47, %v213_v44 }
  0xe7   :  { %v216_v50 = vpop.f32.mrf.mxu1 }
  0xe8   :  { %v151_v51 = vadd.f32 %v212_v48, %v58_v42  ;;  %v156_v52 = vadd.f32 %v215_v49, %v63_v45 }
  0xe9   :  { %v217_v53 = vpop.f32.mrf.mxu1 }
  0xea   :  { %v164_v55 = vmax.f32 %v151_v51, 0.0  ;;  %v165_v56 = vmax.f32 %v156_v52, 0.0  ;;  %v218_v57 = vadd.f32 %v217_v53, %v216_v50 }
  0xec   :  { %167 = vst [vmem:[%s410_s3] sm:$0xff] %v164_v55  ;;  %168 = vst [vmem:[%s410_s3 + $0x8] sm:$0xff] %v165_v56  ;;  %v161_v58 = vadd.f32 %v218_v57, %v68_v54 }
  0xee   :  { %v166_v59 = vmax.f32 %v161_v58, 0.0 }
  0xf0   :  { %169 = vst [vmem:[%s410_s3 + $0x10] sm:$0xf] %v166_v59 }

// kernel: forward.11
= control target key start
LH: loop header
LB: loop body
LE: loop exit
PB: predicated region body
PF: predicated region fallthrough
CT: control target
= control target key end

     0   :  { %v476_v4 = vmov 0.0   ;;  %v477_v5 = vmov 1983009808   ;;  %v74_v7 = vlaneseq  ;;  %vm478_vm0 = vmmov 0   ;;  %s685_s0 = inlined_call_operand.vmem [shape: f32[2,320], index: 0, kind: input, shape index: {}]   ;;  %s686_s1 = inlined_call_operand.vmem [shape: f32[320,50], index: 1, kind: input, shape index: {}]   ;;  %s687_s2 = inlined_call_operand.vmem [shape: f32[1,50], index: 2, kind: input, shape index: {}]   ;;  %s688_s3 = inlined_call_operand.vmem [shape: f32[50,10], index: 3, kind: input, shape index: {}]   ;;  %s689_s4 = inlined_call_operand.vmem [shape: f32[1,10], index: 4, kind: input, shape index: {}]   ;;  %s690_s5 = inlined_call_operand.hbm [shape: f32[2,10], index: 5, kind: output, shape index: {}]  }
   0x1   :  { %v53_v0 = vld [vmem:[%s686_s1 + $0xf8] sm:$0xff]  ;;  %v52_v2 = vld [vmem:[%s686_s1 + $0xf0] sm:$0xff]  ;;  %409 = vmatprep.subr.mxu1 %v476_v4  ;;  %v72_v6 = vunpack.c.l.s4 %v477_v5  ;;  %v51_v8 = vld [vmem:[%s686_s1 + $0xe8] sm:$0xff]  ;;  %425 = vmatprep.mubr.msk.f32.mxu1 %vm478_vm0, %v476_v4 }
   0x2   :  { %v37_v1 = vld [vmem:[%s686_s1 + $0x78] sm:$0xff]  ;;  %357 = vmatprep.subr.mxu0 %v53_v0  ;;  %v36_v3 = vld [vmem:[%s686_s1 + $0x70] sm:$0xff]  ;;  %v35_v9 = vld [vmem:[%s686_s1 + $0x68] sm:$0xff]  ;;  %v75_v13 = vshrl.u32 %v74_v7, 7 }
   0x3   :  { %358 = vmatpush3.msra.mxu0 %v37_v1  ;;  %v50_v10 = vld [vmem:[%s686_s1 + $0xe0] sm:$0xff]  ;;  %v73_v12 = vunpack.c.0.s8 %v72_v6  ;;  %v49_v14 = vld [vmem:[%s686_s1 + $0xd8] sm:$0xff]  ;;  %v48_v17 = vld [vmem:[%s686_s1 + $0xd0] sm:$0xff] }
   0x4   :  { %359 = vmatprep.subr.mxu0 %v52_v2  ;;  %v34_v11 = vld [vmem:[%s686_s1 + $0x60] sm:$0xff]  ;;  %v33_v15 = vld [vmem:[%s686_s1 + $0x58] sm:$0xff]  ;;  %v60_v18 = vld [vmem:[%s686_s1 + $0x130] sm:$0xff] }
   0x5   :  { %360 = vmatpush3.msra.mxu0 %v36_v3  ;;  %v61_v16 = vld [vmem:[%s686_s1 + $0x138] sm:$0xff]  ;;  %v32_v19 = vld [vmem:[%s686_s1 + $0x50] sm:$0xff]  ;;  %v59_v20 = vld [vmem:[%s686_s1 + $0x128] sm:$0xff]  ;;  %v76_v21 = vsub.s32 %v73_v12, %v75_v13 }
   0x6   :  { %361 = vmatprep.subr.mxu0 %v51_v8  ;;  %410 = vmatpush3.msra.mxu1 %v61_v16  ;;  %v47_v22 = vld [vmem:[%s686_s1 + $0xc8] sm:$0xff]  ;;  %v58_v24 = vld [vmem:[%s686_s1 + $0x120] sm:$0xff]  ;;  %v57_v28 = vld [vmem:[%s686_s1 + $0x118] sm:$0xff] }
   0x7   :  { %362 = vmatpush3.msra.mxu0 %v35_v9  ;;  %411 = vmatprep.subr.mxu1 %v476_v4  ;;  %v31_v23 = vld [vmem:[%s686_s1 + $0x48] sm:$0xff]  ;;  %v46_v25 = vld [vmem:[%s686_s1 + $0xc0] sm:$0xff]  ;;  %v45_v30 = vld [vmem:[%s686_s1 + $0xb8] sm:$0xff] }
   0x8   :  { %363 = vmatprep.subr.mxu0 %v50_v10  ;;  %412 = vmatpush3.msra.mxu1 %v60_v18  ;;  %v21_v26 = vld [vmem:[%s685_s0] sm:$0x3f] }
   0x9   :  { %364 = vmatpush3.msra.mxu0 %v34_v11  ;;  %413 = vmatprep.subr.mxu1 %v476_v4  ;;  %v30_v27 = vld [vmem:[%s686_s1 + $0x40] sm:$0xff]  ;;  %v77_v29 = vrot.slane %v21_v26, %v76_v21 }
   0xa   :  { %365 = vmatprep.subr.mxu0 %v49_v14  ;;  %414 = vmatpush3.msra.mxu1 %v59_v20 }
   0xb   :  { %366 = vmatpush3.msra.mxu0 %v33_v15  ;;  %415 = vmatprep.subr.mxu1 %v476_v4 }
   0xc   :  { %367 = vmatprep.subr.mxu0 %v48_v17  ;;  %416 = vmatpush3.msra.mxu1 %v58_v24 }
   0xd   :  { %368 = vmatpush3.msra.mxu0 %v32_v19 }
   0xe   :  { %369 = vmatprep.subr.mxu0 %v47_v22 }
   0xf   :  { %370 = vmatpush3.msra.mxu0 %v31_v23 }
  0x10   :  { %10 = vsyncpa [#allocation3], 0  ;;  %371 = vmatprep.subr.mxu0 %v46_v25  ;;  %v29_v31 = vld [vmem:[%s686_s1 + $0x38] sm:$0xff]  ;;  %417 = vmatprep.subr.mxu1 %v476_v4  ;;  %v85_v32 = vcombine.high %v77_v29, %v77_v29  ;;  %v44_v33 = vld [vmem:[%s686_s1 + $0xb0] sm:$0xff]  ;;  %v70_v34 = vcombine.high %v21_v26, %v21_v26  ;;  %vm88_vm1 = vcmask 523264   ;;  %vm250_vm2 = vcmask 1041408  }
  0x11   :  { %372 = vmatpush3.msra.mxu0 %v30_v27  ;;  %418 = vmatpush3.msra.mxu1 %v57_v28  ;;  %v56_v35 = vld [vmem:[%s686_s1 + $0x110] sm:$0xff]  ;;  %v43_v37 = vld [vmem:[%s686_s1 + $0xa8] sm:$0xff]  ;;  %v42_v40 = vld [vmem:[%s686_s1 + $0xa0] sm:$0xff]  ;;  %vm246_vm3 = vcmask 408576   ;;  %vm324_vm4 = vcmask 74752  }
  0x12   :  { %373 = vmatprep.subr.mxu0 %v45_v30  ;;  %v28_v36 = vld [vmem:[%s686_s1 + $0x30] sm:$0xff]  ;;  %419 = vmatprep.subr.mxu1 %v476_v4  ;;  %v55_v38 = vld [vmem:[%s686_s1 + $0x108] sm:$0xff]  ;;  %v84_v41 = vrot.slane %v70_v34, %v76_v21  ;;  %v54_v42 = vld [vmem:[%s686_s1 + $0x100] sm:$0xff] }
  0x13   :  { %374 = vmatpush3.msra.mxu0 %v29_v31  ;;  %155 = vmatprep.mubr.f32.mxu0 %v85_v32  ;;  %v27_v39 = vld [vmem:[%s686_s1 + $0x28] sm:$0xff]  ;;  %v26_v43 = vld [vmem:[%s686_s1 + $0x20] sm:$0xff]  ;;  %v41_v44 = vld [vmem:[%s686_s1 + $0x98] sm:$0xff] }
  0x14   :  { %375 = vmatprep.subr.mxu0 %v44_v33  ;;  %420 = vmatpush3.msra.mxu1 %v56_v35  ;;  %v25_v45 = vld [vmem:[%s686_s1 + $0x18] sm:$0xff]  ;;  %v238_v46 = vld [vmem:[%s688_s3 + $0x30] sm:$0x3]  ;;  %v39_v49 = vld [vmem:[%s686_s1 + $0x88] sm:$0xff] }
  0x15   :  { %376 = vmatpush3.msra.mxu0 %v28_v36  ;;  %421 = vmatprep.subr.mxu1 %v476_v4  ;;  %v40_v47 = vld [vmem:[%s686_s1 + $0x90] sm:$0xff]  ;;  %v23_v50 = vld [vmem:[%s686_s1 + $0x8] sm:$0xff]  ;;  %v38_v51 = vld [vmem:[%s686_s1 + $0x80] sm:$0xff] }
  0x16   :  { %377 = vmatprep.subr.mxu0 %v43_v37  ;;  %422 = vmatpush3.msra.mxu1 %v55_v38  ;;  %v24_v48 = vld [vmem:[%s686_s1 + $0x10] sm:$0xff]  ;;  %v22_v52 = vld [vmem:[%s686_s1] sm:$0xff]  ;;  %v237_v53 = vld [vmem:[%s688_s3 + $0x28] sm:$0xff] }
  0x17   :  { %378 = vmatpush3.msra.mxu0 %v27_v39  ;;  %423 = vmatprep.subr.mxu1 %v476_v4  ;;  %v236_v54 = vld [vmem:[%s688_s3 + $0x20] sm:$0xff]  ;;  %v235_v55 = vld [vmem:[%s688_s3 + $0x18] sm:$0xff]  ;;  %v234_v56 = vld [vmem:[%s688_s3 + $0x10] sm:$0xff] }
  0x18   :  { %379 = vmatprep.subr.mxu0 %v42_v40  ;;  %424 = vmatpush3.msra.mxu1 %v54_v42  ;;  %v233_v57 = vld [vmem:[%s688_s3 + $0x8] sm:$0xff]  ;;  %v232_v58 = vld [vmem:[%s688_s3] sm:$0xff] }
  0x19   :  { %380 = vmatpush3.msra.mxu0 %v26_v43  ;;  %426 = vmatmul.mubr.msk.f32.vlgmr.msra.gmra.mxu1 %vm88_vm1, %v84_v41  ;;  %v352_v63 = vld [vmem:[%s687_s2] ss:$0 sm:$0xff]  ;;  %s479_s2 = smov [#allocation2]  }
  0x1a   :  { %381 = vmatprep.subr.mxu0 %v41_v44  ;;  %428 = vmatprep.subr.mxu1 %v476_v4  ;;  %s344_s3 = sshll.u32 %s479_s2, 4  ;;  %s345_s3 = int_to_ptr.vmem [resolvable:$true] %s344_s3 }
  0x1b   :  { %382 = vmatpush3.msra.mxu0 %v25_v45  ;;  %429 = vmatpush3.msk.msra.mxu1 %vm250_vm2, %v238_v46  ;;  %p459_p1 = scmp.lt.s32.totalorder %s345_s3, %s345_s3 }
  0x1c   :  { %383 = vmatprep.subr.mxu0 %v40_v47  ;;  %430 = vmatprep.subr.mxu1 %v476_v4 }
  0x1d   :  { %384 = vmatpush3.msra.mxu0 %v24_v48  ;;  %442 = vmatprep.mubr.msk.f32.mxu1 %vm478_vm0, %v476_v4 }
  0x1e   :  { %385 = vmatprep.subr.mxu0 %v39_v49  ;;  %431 = vmatpush3.msra.mxu1 %v237_v53 }
  0x1f   :  { %386 = vmatpush3.msra.mxu0 %v23_v50  ;;  %432 = vmatprep.subr.mxu1 %v476_v4 }
  0x20   :  { %387 = vmatprep.subr.mxu0 %v38_v51  ;;  %433 = vmatpush3.msra.mxu1 %v236_v54 }
  0x21   :  { %388 = vmatpush3.msra.mxu0 %v22_v52  ;;  %434 = vmatprep.subr.mxu1 %v476_v4 }
  0x22   :  { %156 = vmatmul.mubr.f32.vlgmr.msra.gmra.mxu0 %v77_v29  ;;  %435 = vmatpush3.msra.mxu1 %v235_v55 }
  0x23   :  { %436 = vmatprep.subr.mxu1 %v476_v4 }
  0x24   :  { %437 = vmatpush3.msra.mxu1 %v234_v56 }
  0x25   :  { %438 = vmatprep.subr.mxu1 %v476_v4 }
  0x26   :  { %439 = vmatpush3.msra.mxu1 %v233_v57 }
  0x27   :  { %440 = vmatprep.subr.mxu1 %v476_v4  ;;  %v354_v4 = vld [vmem:[%s689_s4] ss:$0 sm:$0xff]  ;;  %s454_s4 = scalar_lea.vmem %s345_s3, 32 }
  0x28   :  { %441 = vmatpush3.msra.mxu1 %v232_v58  ;;  %p455_p0 = scmp.ne.s32.totalorder %s345_s3, %s454_s4  ;;  %p460_p2 = scmp.lt.s32.totalorder %s454_s4, %s454_s4 }
  0x2a   :  { %p461_p3 = por %p460_p2, %p459_p1 }
  0x2c   :  { %p462_p4 = pnand %p461_p3, %p455_p0 }
  0xd9   :  { %v227_v59 = vpop.f32.mrf.mxu1 }
  0xdb   :  { %v427_v60 = vpop.f32.mrf.mxu1 }
  0xe2   :  { %v389_v61 = vpop.f32.mrf.mxu0 }
  0xe4   :  { %v390_v62 = vpop.f32.mrf.mxu0 }
  0xe5   :  { %v391_v0 = vadd.f32 %v390_v62, %v389_v61 }
  0xe7   :  { %v158_v1 = vadd.f32 %v391_v0, %v352_v63 }
  0xe9   :  { %v228_v2 = vadd.f32 %v227_v59, %v158_v1 }
  0xeb   :  { %v231_v3 = vmax.f32 %v228_v2, 0.0 }
  0xed   :  { %443 = vmatmul.mubr.msk.f32.vlgmr.msra.gmra.mxu1 %vm246_vm3, %v231_v3 }
 0x1ad   :  { %v320_v5 = vpop.f32.mrf.mxu1 }
 0x1ae   :  { %v321_v6 = vadd.f32 %v354_v4, %v320_v5 }
 0x1af   :  { %v444_v7 = vpop.f32.mrf.mxu1 }
 0x1b0   :  { %v325_v8 = vsel %vm324_vm4, %v321_v6, -inf }
 0x1b1   :  { %326 = vmax.xlane.f32.xlu0 %v325_v8 }
 0x23a   :  { %v327_v9 = vpop.xlane.xlu0 %326 }
 0x23b   :  { %v328_v10 = vsub.f32 %v321_v6, %v327_v9 }
 0x23d   :  { %v329_v11 = vmul.f32 1.442695, %v328_v10 }
 0x23f   :  { %450 = vpow2.f32 %v329_v11 }
 0x24c   :  { %v451_v12 = vpop.eup %450 }
 0x24d   :  { %v331_v13 = vsel %vm324_vm4, %v451_v12, 0.0 }
 0x24e   :  { %332 = vadd.xlane.f32.xlu0 %v331_v13 }
 0x2d7   :  { %v333_v14 = vpop.xlane.xlu0 %332 }
 0x2d8   :  { %452 = vlog2.f32 %v333_v14 }
 0x2e5   :  { %v453_v15 = vpop.eup %452 }
 0x2e6   :  { %v335_v16 = vmul.f32 0.6931472, %v453_v15 }
 0x2e8   :  { %v336_v17 = vsub.f32 %v328_v10, %v335_v16 }
 0x2ea   :  { %337 = vst.msk [vmem:[#allocation2] sm:$0x3] %vm324_vm4, %v336_v17 }
 0x2eb   :  { %465 = shalt.err (!%p462_p4)
}
 0x2ec   :  { %347 = dma.vmem_to_hbm [thread:$0]  %s345_s3, 32, %s690_s5, [#allocation3]  }
 0x2ed   :  { %474 = dma.done.wait [#allocation3], 32  }
 0x2ee   :  { %475 = vsyncadd [#allocation3], 4294967264 }
 0x2ef   :  { %351 = vsyncpa [#allocation3], 1 }

</bundles_post_ra>
